<compile_context>
chip_gen: v5e
topology: v5e:2x2
jax: 0.10.0
libtpu: 0.0.40
codegen_flags: <defaults>
</compile_context>

<pallas_src>
import math

import numpy as np
import jax
import jax.numpy as jnp
from jax import lax
from jax.experimental import pallas as pl
from jax.experimental.pallas import tpu as pltpu

# ---- deterministic stand-ins for the random.uniform(...) draws in __init__ ----
ZOOM_RATE = 0.85          # uniform(0.7, 1.0)   (zoom branch: see TODO below)
SIGMA1 = 0.9              # uniform(0.5, 1.5)
SIGMA2 = 1.2              # uniform(0.5, 1.5)
NOISE_STD = 0.20          # uniform(0.0, 0.33)
GAMMA = 1.1               # uniform(0.65, 1.5)
ALPHA = 30.0              # MONAI GaussianSharpen default alpha
EPS = 1e-7                # MONAI AdjustContrast epsilon


# ---------------- host-side Toeplitz / Kronecker blur operators (trace-time constants) ----
def _gaussian_taps(sigma, truncated=4.0):
    """Sampled, normalized, truncated Gaussian taps (MONAI uses an erf-based variant)."""
    r = max(int(truncated * sigma + 0.5), 1)
    x = np.arange(-r, r + 1, dtype=np.float64)
    w = np.exp(-0.5 * (x / sigma) ** 2)
    return w / w.sum()


def _toeplitz(n, taps):
    """[n, n] matrix T such that (x @ T) == 'same' zero-padded 1-D convolution of x with taps."""
    r = (len(taps) - 1) // 2
    t = np.zeros((n, n), np.float64)
    for m in range(n):
        for k, w in enumerate(taps):
            i = m + k - r
            if 0 <= i < n:
                t[m, i] = w
    return t


def _blur_operators(b_tile, C, D, H, W):
    """Blur operators acting on batch-tiled volumes flattened to [B_TILE*C*D, H*W].

    Sharpen = (1+ALPHA) * (TL1 @ x @ TR1) - ALPHA * (TLC @ x @ TRC); the second blur of
    GaussianSharpen uses the composed per-axis operator (T1 @ T2), which is exact because the
    per-axis 1-D blurs act on independent tensor axes.  ALPHA is folded into the left operators
    so the kernel epilogue is a single subtract.  Operators are bf16 (MXU-peak dtype).
    """
    w1, w2 = _gaussian_taps(SIGMA1), _gaussian_taps(SIGMA2)
    t1 = {n: _toeplitz(n, w1) for n in (D, H, W)}
    t2 = {n: _toeplitz(n, w2) for n in (D, H, W)}
    eye = np.eye(b_tile * C)
    tl1 = (1.0 + ALPHA) * np.kron(eye, t1[D].T)            # [R, R]  sigma1 along D, x(1+a)
    tlc = ALPHA * np.kron(eye, (t1[D] @ t2[D]).T)          # [R, R]  composed s2∘s1, x a
    # TODO(synk): at realistic volumes (64^3+) replace these kron operators with per-axis
    # T_H / T_W matmuls + halo tiling; O((H*W)^2) cannot fit v7x's 64 MiB VMEM.
    tr1 = np.kron(t1[H], t1[W])                            # [HW, HW] sigma1 along H, W
    trc = np.kron(t1[H] @ t2[H], t1[W] @ t2[W])            # [HW, HW] composed along (H, W)
    bf = lambda a: jnp.asarray(a, dtype=jnp.bfloat16)
    return bf(tl1), bf(tr1), bf(tlc), bf(trc)


def _pick_b_tile(B, vol_bytes, target_bytes=1 << 20):
    """Largest batch tile whose block stays ~<= 1 MiB; keep grid length >= 2 when B allows it
    so dimension_semantics=("parallel",) can split work across v7x's two TensorCores."""
    divs = [d for d in range(1, B + 1) if B % d == 0]
    fit = [d for d in divs if d * vol_bytes <= target_bytes] or [1]
    multi = [d for d in fit if B // d >= 2]
    return max(multi) if multi else max(fit)


# ------------------------------------- the kernel -------------------------------------
def _make_kernel(B_TILE, CD, HW):
    R = B_TILE * CD
    INV24 = np.float32(1.0 / (1 << 24))
    N_UNI = 6                                             # Irwin-Hall: sum of 6 U(0,1)
    NORM_SCALE = np.float32(math.sqrt(12.0 / N_UNI))      # -> unit variance

    def kernel(flags_ref, seed_ref, img_ref, tl1_ref, tr1_ref, tlc_ref, trc_ref, out_ref):
        # flags_ref: SMEM int32 [B*3] = per volume [noise, blur, contrast]
        # seed_ref:  SMEM int32 [1]   = global PRNG seed
        # img_ref / out_ref: VMEM f32 [B_TILE*C*D, H*W] (current batch tile, lane-dense)
        g = pl.program_id(0)
        out_ref[...] = img_ref[...]

        row = lax.broadcasted_iota(jnp.int32, (R, 1), 0)

        def tile_flags(j):
            return [flags_ref[(g * B_TILE + t) * 3 + j] for t in range(B_TILE)]

        def row_mask(fs):
            # f32 per-row mask: 1.0 on rows belonging to volumes whose flag is set
            m = jnp.zeros((R, 1), jnp.float32)
            for t, f in enumerate(fs):
                in_vol = jnp.logical_and(row >= t * CD, row < (t + 1) * CD)
                m = jnp.where(in_vol, f.astype(jnp.float32), m)
            return m

        noise_f = tile_flags(0)
        blur_f = tile_flags(1)
        con_f = tile_flags(2)

        # ---------- RandGaussianNoise (15% of volumes) ----------
        # Pure-jnp hash PRNG (lowbias32-style mixer) + Irwin-Hall normal approximation:
        # avoids pltpu.prng_* (no CPU/interpret lowering) and any HBM noise stream.
        @pl.when(sum(noise_f) > 0)
        def _noise():
            mask = row_mask(noise_f)
            seed = seed_ref[0].astype(jnp.uint32)
            rr = lax.broadcasted_iota(jnp.int32, (R, HW), 0).astype(jnp.uint32)
            cc = lax.broadcasted_iota(jnp.int32, (R, HW), 1).astype(jnp.uint32)
            s = (seed + g.astype(jnp.uint32) * jnp.uint32(R * HW)
                 + rr * jnp.uint32(HW) + cc)

            def mix(x):
                x = x ^ (x >> jnp.uint32(16))
                x = x * jnp.uint32(0x7FEB352D)
                x = x ^ (x >> jnp.uint32(15))
                x = x * jnp.uint32(0x846CA68B)
                x = x ^ (x >> jnp.uint32(16))
                return x

            acc = jnp.zeros((R, HW), jnp.float32)
            for _ in range(N_UNI):
                s = mix(s + jnp.uint32(0x9E3779B9))
                acc = acc + (s >> jnp.uint32(8)).astype(jnp.float32) * INV24
            n01 = (acc - np.float32(0.5 * N_UNI)) * NORM_SCALE   # ~N(0,1) (augmentation-grade)
            out_ref[...] = out_ref[...] + (np.float32(NOISE_STD) * mask) * n01

        # ---------- GaussianSharpen (MXU matmuls, ALPHA folded into operators) ----------
        @pl.when(sum(blur_f) > 0)
        def _sharpen():
            mask = row_mask(blur_f)
            x0 = out_ref[...]
            x = x0.astype(jnp.bfloat16)
            b1 = jnp.dot(tl1_ref[...], x, preferred_element_type=jnp.float32)
            b1 = jnp.dot(b1.astype(jnp.bfloat16), tr1_ref[...],
                         preferred_element_type=jnp.float32)
            b2 = jnp.dot(tlc_ref[...], x, preferred_element_type=jnp.float32)
            b2 = jnp.dot(b2.astype(jnp.bfloat16), trc_ref[...],
                         preferred_element_type=jnp.float32)
            sharp = b1 - b2                                   # = (1+a)*blur1 - a*blur2
            out_ref[...] = x0 + mask * (sharp - x0)

        # ---------- AdjustContrast (per-volume min / max / gamma) ----------
        @pl.when(sum(con_f) > 0)
        def _contrast():
            mask = row_mask(con_f)
            x = out_ref[...]
            x3 = x.reshape(B_TILE, CD, HW)
            mn = jnp.min(jnp.min(x3, axis=2, keepdims=True), axis=1, keepdims=True)
            mx = jnp.max(jnp.max(x3, axis=2, keepdims=True), axis=1, keepdims=True)
            rng = mx - mn
            inv = 1.0 / (rng + np.float32(EPS))
            norm = (x3 - mn) * inv
            powed = jnp.where(
                norm > 0.0,
                jnp.exp(np.float32(GAMMA) * jnp.log(jnp.maximum(norm, np.float32(1e-30)))),
                np.float32(0.0))
            adj = (powed * rng + mn).reshape(R, HW)
            out_ref[...] = x + mask * (adj - x)

    return kernel


def augment_images(img3, flags, seed, *, C, D, H, W):
    """img3: [B, C*D, H*W] f32; flags: [B*3] int32 (noise, blur, contrast per volume);
    seed: [1] int32."""
    B, CD, HW = img3.shape
    assert CD == C * D and HW == H * W
    vol_bytes = CD * HW * img3.dtype.itemsize
    b_tile = _pick_b_tile(B, vol_bytes)
    G = B // b_tile
    R = b_tile * CD

    tl1, tr1, tlc, trc = _blur_operators(b_tile, C, D, H, W)
    img4 = img3.reshape(G, R, HW)                       # contiguous, no copy

    kernel = _make_kernel(b_tile, CD, HW)
    vol_spec = pl.BlockSpec((None, R, HW), lambda g: (g, 0, 0))

    def full_mat(n):
        # Constant operators (index_map returns the same block every step, so they are DMA'd
        # only once; at these sizes default double-buffering costs a few hundred KiB).
        return pl.BlockSpec((n, n), lambda g: (0, 0))

    out4 = pl.pallas_call(
        kernel,
        out_shape=jax.ShapeDtypeStruct((G, R, HW), img3.dtype),
        grid=(G,),
        in_specs=[
            pl.BlockSpec(memory_space=pltpu.MemorySpace.SMEM),   # flags (flat 1-D)
            pl.BlockSpec(memory_space=pltpu.MemorySpace.SMEM),   # seed
            vol_spec,                                            # batch-tiled volumes
            full_mat(R), full_mat(HW), full_mat(R), full_mat(HW),
        ],
        out_specs=vol_spec,
        input_output_aliases={2: 0},                             # reuse the image HBM buffer
        compiler_params=pltpu.CompilerParams(
            dimension_semantics=("parallel",),                   # batch tiles across TCs (v7x)
            vmem_limit_bytes=32 * 1024 * 1024,                   # working set here is << 1 MiB
        ),
    )(flags, seed, img4, tl1, tr1, tlc, trc)
    return out4.reshape(B, CD, HW)


# --------------------------------------- JAX glue ---------------------------------------
def _fused_flip(x6, f_d, f_h, f_w):
    """x6: [B, 1, C, D, H, W]; f_*: [B] bool.  Applies the three conditional axis flips with a
    single gather per array (instead of 3x flip + where full passes)."""
    B, one, C, D, H, W = x6.shape
    dd, hh, ww = jnp.arange(D), jnp.arange(H), jnp.arange(W)
    d_idx = jnp.where(f_d[:, None], D - 1 - dd, dd)             # [B, D]
    h_idx = jnp.where(f_h[:, None], H - 1 - hh, hh)             # [B, H]
    w_idx = jnp.where(f_w[:, None], W - 1 - ww, ww)             # [B, W]
    flat = ((d_idx[:, :, None, None] * H + h_idx[:, None, :, None]) * W
            + w_idx[:, None, None, :]).reshape(B, 1, 1, D * H * W)
    flat = jnp.broadcast_to(flat, (B, one, C, D * H * W))
    xf = x6.reshape(B, one, C, D * H * W)
    return jnp.take_along_axis(xf, flat, axis=3).reshape(x6.shape)


def data_augmenter_forward(images, labels, key):
    """images/labels: [B, 1, C, D, H, W]. Returns (images_out, labels_out)."""
    B, _, C, D, H, W = images.shape
    k_u, k_seed = jax.random.split(key)
    # per-batch forward-time draws: [zoom, flipD, flipH, flipW, noise, blur, contrast]
    u = jax.random.uniform(k_u, (B, 7))

    # TODO(synk): the 15%-probability Zoom branch (MONAI trilinear/nearest resize by ZOOM_RATE
    # + constant pad back) has no clean Pallas equivalent here and is skipped.

    f_d, f_h, f_w = (u[:, 1] < 0.5), (u[:, 2] < 0.5), (u[:, 3] < 0.5)
    img = _fused_flip(images, f_d, f_h, f_w)
    lab = _fused_flip(labels, f_d, f_h, f_w)

    flags = (u[:, 4:7] < 0.15).astype(jnp.int32).reshape(-1)     # [B*3]
    seed = jax.random.randint(k_seed, (1,), 0, 2 ** 31 - 1, dtype=jnp.int32)

    img3 = img[:, 0].reshape(B, C * D, H * W)                    # lane-dense re-layout
    out3 = augment_images(img3, flags, seed, C=C, D=D, H=H, W=W)
    return out3.reshape(B, 1, C, D, H, W), lab


if __name__ == "__main__":
    B, C, D, H, W = 2, 2, 8, 16, 16
    key = jax.random.PRNGKey(0)
    k_img, k_lab, k_aug = jax.random.split(key, 3)
    images = jax.random.normal(k_img, (B, 1, C, D, H, W), jnp.float32)
    labels = (jax.random.uniform(k_lab, (B, 1, C, D, H, W)) > 0.5).astype(jnp.float32)

    # Smoke run with every augmentation branch forced ON so the noise / sharpen / contrast
    # pl.when bodies all execute at runtime at least once.
    img3 = images[:, 0].reshape(B, C * D, H * W)
    forced = jnp.ones((B * 3,), jnp.int32)
    seed = jnp.array([1234], jnp.int32)
    smoke = augment_images(img3, forced, seed, C=C, D=D, H=H, W=W)
    jax.block_until_ready(smoke)
    assert smoke.shape == img3.shape
    assert bool(jnp.all(jnp.isfinite(smoke)))

    # Normal forward pass (random 15% / 50% gates, as in the PyTorch module).
    out_images, out_labels = data_augmenter_forward(images, labels, k_aug)
    jax.block_until_ready((out_images, out_labels))
    assert out_images.shape == images.shape and out_labels.shape == labels.shape
    print("KERNEL_OK")
</pallas_src>

<mosaic_0001>
module attributes {stable_mosaic.version = 11 : i64} {
  func.func @kernel(%arg0: i32, %arg1: memref<6xi32, #tpu.memory_space<smem>>, %arg2: memref<1xi32, #tpu.memory_space<smem>>, %arg3: memref<1x16x256xf32, #tpu.memory_space<vmem>>, %arg4: memref<16x16xbf16, #tpu.memory_space<vmem>>, %arg5: memref<256x256xbf16, #tpu.memory_space<vmem>>, %arg6: memref<16x16xbf16, #tpu.memory_space<vmem>>, %arg7: memref<256x256xbf16, #tpu.memory_space<vmem>>, %arg8: memref<1x16x256xf32, #tpu.memory_space<vmem>>) attributes {dimension_semantics = [#tpu.dimension_semantics<parallel>], iteration_bounds = array<i64: 2>, scalar_prefetch = 0 : i64, scratch_operands = 0 : i64, tpu.core_type = #tpu.core_type<tc>, window_params = [{transform_indices = @transform_0, window_bounds = array<i64: 6>}, {transform_indices = @transform_1, window_bounds = array<i64: 1>}, {transform_indices = @transform_2, window_bounds = array<i64: 1, 16, 256>}, {pipeline_mode = #tpu.pipeline_mode<synchronous>, transform_indices = @transform_3, window_bounds = array<i64: 16, 16>}, {pipeline_mode = #tpu.pipeline_mode<synchronous>, transform_indices = @transform_4, window_bounds = array<i64: 256, 256>}, {pipeline_mode = #tpu.pipeline_mode<synchronous>, transform_indices = @transform_5, window_bounds = array<i64: 16, 16>}, {pipeline_mode = #tpu.pipeline_mode<synchronous>, transform_indices = @transform_6, window_bounds = array<i64: 256, 256>}, {transform_indices = @transform_7, window_bounds = array<i64: 1, 16, 256>}]} {
    %c0 = arith.constant 0 : index
    %c0_0 = arith.constant 0 : index
    %c0_1 = arith.constant 0 : index
    %0 = vector.load %arg3[%c0, %c0_0, %c0_1] : memref<1x16x256xf32, #tpu.memory_space<vmem>>, vector<1x16x256xf32>
    %1 = vector.shape_cast %0 : vector<1x16x256xf32> to vector<16x256xf32>
    %c0_2 = arith.constant 0 : index
    %c0_3 = arith.constant 0 : index
    %c0_4 = arith.constant 0 : index
    %2 = vector.load %arg8[%c0_2, %c0_3, %c0_4] : memref<1x16x256xf32, #tpu.memory_space<vmem>>, vector<1x16x256xf32>
    %3 = vector.shape_cast %2 : vector<1x16x256xf32> to vector<16x256xf32>
    %4 = vector.shape_cast %1 : vector<16x256xf32> to vector<1x16x256xf32>
    tpu.vector_store %arg8[%c0_2, %c0_3, %c0_4], %4 {strides = array<i32>} : memref<1x16x256xf32, #tpu.memory_space<vmem>>, vector<1x16x256xf32>,
    %5 = tpu.iota {dimensions = array<i32: 0>} : vector<16x1xi32>
    %c1_i32 = arith.constant 1 : i32
    %6 = arith.muli %arg0, %c1_i32 : i32
    %c0_i32 = arith.constant 0 : i32
    %7 = arith.addi %6, %c0_i32 : i32
    %c3_i32 = arith.constant 3 : i32
    %8 = arith.muli %7, %c3_i32 : i32
    %c0_i32_5 = arith.constant 0 : i32
    %9 = arith.addi %8, %c0_i32_5 : i32
    %10 = arith.index_cast %9 : i32 to index
    %11 = memref.load %arg1[%10] : memref<6xi32, #tpu.memory_space<smem>>
    %c1_i32_6 = arith.constant 1 : i32
    %12 = arith.muli %arg0, %c1_i32_6 : i32
    %c0_i32_7 = arith.constant 0 : i32
    %13 = arith.addi %12, %c0_i32_7 : i32
    %c3_i32_8 = arith.constant 3 : i32
    %14 = arith.muli %13, %c3_i32_8 : i32
    %c1_i32_9 = arith.constant 1 : i32
    %15 = arith.addi %14, %c1_i32_9 : i32
    %16 = arith.index_cast %15 : i32 to index
    %17 = memref.load %arg1[%16] : memref<6xi32, #tpu.memory_space<smem>>
    %c1_i32_10 = arith.constant 1 : i32
    %18 = arith.muli %arg0, %c1_i32_10 : i32
    %c0_i32_11 = arith.constant 0 : i32
    %19 = arith.addi %18, %c0_i32_11 : i32
    %c3_i32_12 = arith.constant 3 : i32
    %20 = arith.muli %19, %c3_i32_12 : i32
    %c2_i32 = arith.constant 2 : i32
    %21 = arith.addi %20, %c2_i32 : i32
    %22 = arith.index_cast %21 : i32 to index
    %23 = memref.load %arg1[%22] : memref<6xi32, #tpu.memory_space<smem>>
    %c0_i32_13 = arith.constant 0 : i32
    %24 = arith.addi %c0_i32_13, %11 : i32
    %c0_i32_14 = arith.constant 0 : i32
    %25 = arith.cmpi sgt, %24, %c0_i32_14 : i32
    %26 = arith.extui %25 : i1 to i32
    %c0_i32_15 = arith.constant 0 : i32
    %27 = arith.cmpi ne, %26, %c0_i32_15 : i32
    scf.if %27 {
      %cst = arith.constant 0.000000e+00 : f32
      %36 = vector.broadcast %cst : f32 to vector<16x1xf32>
      %c0_i32_22 = arith.constant 0 : i32
      %37 = vector.broadcast %c0_i32_22 : i32 to vector<16x1xi32>
      %38 = arith.cmpi sge, %5, %37 : vector<16x1xi32>
      %c16_i32 = arith.constant 16 : i32
      %39 = vector.broadcast %c16_i32 : i32 to vector<16x1xi32>
      %40 = arith.cmpi slt, %5, %39 : vector<16x1xi32>
      %41 = arith.andi %38, %40 : vector<16x1xi1>
      %42 = arith.sitofp %11 : i32 to f32
      %43 = vector.broadcast %42 : f32 to vector<16x1xf32>
      %44 = arith.select %41, %43, %36 : vector<16x1xi1>, vector<16x1xf32>
      %c0_23 = arith.constant 0 : index
      %45 = memref.load %arg2[%c0_23] : memref<1xi32, #tpu.memory_space<smem>>
      %46 = tpu.iota {dimensions = array<i32: 0>} : vector<16x256xi32>
      %47 = tpu.iota {dimensions = array<i32: 1>} : vector<16x256xi32>
      %c4096_i32 = arith.constant 4096 : i32
      %48 = arith.muli %arg0, %c4096_i32 : i32
      %49 = arith.addi %45, %48 : i32
      %c256_i32 = arith.constant 256 : i32
      %50 = vector.broadcast %c256_i32 : i32 to vector<16x256xi32>
      %51 = arith.muli %46, %50 : vector<16x256xi32>
      %52 = vector.broadcast %49 : i32 to vector<16x256xi32>
      %53 = arith.addi %52, %51 : vector<16x256xi32>
      %54 = arith.addi %53, %47 : vector<16x256xi32>
      %cst_24 = arith.constant 0.000000e+00 : f32
      %55 = vector.broadcast %cst_24 : f32 to vector<16x256xf32>
      %c-1640531527_i32 = arith.constant -1640531527 : i32
      %56 = vector.broadcast %c-1640531527_i32 : i32 to vector<16x256xi32>
      %57 = arith.addi %54, %56 : vector<16x256xi32>
      %c16_i32_25 = arith.constant 16 : i32
      %58 = vector.broadcast %c16_i32_25 : i32 to vector<16x256xi32>
      %59 = arith.shrui %57, %58 : vector<16x256xi32>
      %60 = arith.xori %57, %59 : vector<16x256xi32>
      %c2146121005_i32 = arith.constant 2146121005 : i32
      %61 = vector.broadcast %c2146121005_i32 : i32 to vector<16x256xi32>
      %62 = arith.muli %60, %61 : vector<16x256xi32>
      %c15_i32 = arith.constant 15 : i32
      %63 = vector.broadcast %c15_i32 : i32 to vector<16x256xi32>
      %64 = arith.shrui %62, %63 : vector<16x256xi32>
      %65 = arith.xori %62, %64 : vector<16x256xi32>
      %c-2073254261_i32 = arith.constant -2073254261 : i32
      %66 = vector.broadcast %c-2073254261_i32 : i32 to vector<16x256xi32>
      %67 = arith.muli %65, %66 : vector<16x256xi32>
      %c16_i32_26 = arith.constant 16 : i32
      %68 = vector.broadcast %c16_i32_26 : i32 to vector<16x256xi32>
      %69 = arith.shrui %67, %68 : vector<16x256xi32>
      %70 = arith.xori %67, %69 : vector<16x256xi32>
      %c8_i32 = arith.constant 8 : i32
      %71 = vector.broadcast %c8_i32 : i32 to vector<16x256xi32>
      %72 = arith.shrui %70, %71 : vector<16x256xi32>
      %73 = arith.uitofp %72 : vector<16x256xi32> to vector<16x256xf32>
      %cst_27 = arith.constant 5.96046448E-8 : f32
      %74 = vector.broadcast %cst_27 : f32 to vector<16x256xf32>
      %75 = arith.mulf %73, %74 : vector<16x256xf32>
      %76 = arith.addf %55, %75 : vector<16x256xf32>
      %c-1640531527_i32_28 = arith.constant -1640531527 : i32
      %77 = vector.broadcast %c-1640531527_i32_28 : i32 to vector<16x256xi32>
      %78 = arith.addi %70, %77 : vector<16x256xi32>
      %c16_i32_29 = arith.constant 16 : i32
      %79 = vector.broadcast %c16_i32_29 : i32 to vector<16x256xi32>
      %80 = arith.shrui %78, %79 : vector<16x256xi32>
      %81 = arith.xori %78, %80 : vector<16x256xi32>
      %c2146121005_i32_30 = arith.constant 2146121005 : i32
      %82 = vector.broadcast %c2146121005_i32_30 : i32 to vector<16x256xi32>
      %83 = arith.muli %81, %82 : vector<16x256xi32>
      %c15_i32_31 = arith.constant 15 : i32
      %84 = vector.broadcast %c15_i32_31 : i32 to vector<16x256xi32>
      %85 = arith.shrui %83, %84 : vector<16x256xi32>
      %86 = arith.xori %83, %85 : vector<16x256xi32>
      %c-2073254261_i32_32 = arith.constant -2073254261 : i32
      %87 = vector.broadcast %c-2073254261_i32_32 : i32 to vector<16x256xi32>
      %88 = arith.muli %86, %87 : vector<16x256xi32>
      %c16_i32_33 = arith.constant 16 : i32
      %89 = vector.broadcast %c16_i32_33 : i32 to vector<16x256xi32>
      %90 = arith.shrui %88, %89 : vector<16x256xi32>
      %91 = arith.xori %88, %90 : vector<16x256xi32>
      %c8_i32_34 = arith.constant 8 : i32
      %92 = vector.broadcast %c8_i32_34 : i32 to vector<16x256xi32>
      %93 = arith.shrui %91, %92 : vector<16x256xi32>
      %94 = arith.uitofp %93 : vector<16x256xi32> to vector<16x256xf32>
      %cst_35 = arith.constant 5.96046448E-8 : f32
      %95 = vector.broadcast %cst_35 : f32 to vector<16x256xf32>
      %96 = arith.mulf %94, %95 : vector<16x256xf32>
      %97 = arith.addf %76, %96 : vector<16x256xf32>
      %c-1640531527_i32_36 = arith.constant -1640531527 : i32
      %98 = vector.broadcast %c-1640531527_i32_36 : i32 to vector<16x256xi32>
      %99 = arith.addi %91, %98 : vector<16x256xi32>
      %c16_i32_37 = arith.constant 16 : i32
      %100 = vector.broadcast %c16_i32_37 : i32 to vector<16x256xi32>
      %101 = arith.shrui %99, %100 : vector<16x256xi32>
      %102 = arith.xori %99, %101 : vector<16x256xi32>
      %c2146121005_i32_38 = arith.constant 2146121005 : i32
      %103 = vector.broadcast %c2146121005_i32_38 : i32 to vector<16x256xi32>
      %104 = arith.muli %102, %103 : vector<16x256xi32>
      %c15_i32_39 = arith.constant 15 : i32
      %105 = vector.broadcast %c15_i32_39 : i32 to vector<16x256xi32>
      %106 = arith.shrui %104, %105 : vector<16x256xi32>
      %107 = arith.xori %104, %106 : vector<16x256xi32>
      %c-2073254261_i32_40 = arith.constant -2073254261 : i32
      %108 = vector.broadcast %c-2073254261_i32_40 : i32 to vector<16x256xi32>
      %109 = arith.muli %107, %108 : vector<16x256xi32>
      %c16_i32_41 = arith.constant 16 : i32
      %110 = vector.broadcast %c16_i32_41 : i32 to vector<16x256xi32>
      %111 = arith.shrui %109, %110 : vector<16x256xi32>
      %112 = arith.xori %109, %111 : vector<16x256xi32>
      %c8_i32_42 = arith.constant 8 : i32
      %113 = vector.broadcast %c8_i32_42 : i32 to vector<16x256xi32>
      %114 = arith.shrui %112, %113 : vector<16x256xi32>
      %115 = arith.uitofp %114 : vector<16x256xi32> to vector<16x256xf32>
      %cst_43 = arith.constant 5.96046448E-8 : f32
      %116 = vector.broadcast %cst_43 : f32 to vector<16x256xf32>
      %117 = arith.mulf %115, %116 : vector<16x256xf32>
      %118 = arith.addf %97, %117 : vector<16x256xf32>
      %c-1640531527_i32_44 = arith.constant -1640531527 : i32
      %119 = vector.broadcast %c-1640531527_i32_44 : i32 to vector<16x256xi32>
      %120 = arith.addi %112, %119 : vector<16x256xi32>
      %c16_i32_45 = arith.constant 16 : i32
      %121 = vector.broadcast %c16_i32_45 : i32 to vector<16x256xi32>
      %122 = arith.shrui %120, %121 : vector<16x256xi32>
      %123 = arith.xori %120, %122 : vector<16x256xi32>
      %c2146121005_i32_46 = arith.constant 2146121005 : i32
      %124 = vector.broadcast %c2146121005_i32_46 : i32 to vector<16x256xi32>
      %125 = arith.muli %123, %124 : vector<16x256xi32>
      %c15_i32_47 = arith.constant 15 : i32
      %126 = vector.broadcast %c15_i32_47 : i32 to vector<16x256xi32>
      %127 = arith.shrui %125, %126 : vector<16x256xi32>
      %128 = arith.xori %125, %127 : vector<16x256xi32>
      %c-2073254261_i32_48 = arith.constant -2073254261 : i32
      %129 = vector.broadcast %c-2073254261_i32_48 : i32 to vector<16x256xi32>
      %130 = arith.muli %128, %129 : vector<16x256xi32>
      %c16_i32_49 = arith.constant 16 : i32
      %131 = vector.broadcast %c16_i32_49 : i32 to vector<16x256xi32>
      %132 = arith.shrui %130, %131 : vector<16x256xi32>
      %133 = arith.xori %130, %132 : vector<16x256xi32>
      %c8_i32_50 = arith.constant 8 : i32
      %134 = vector.broadcast %c8_i32_50 : i32 to vector<16x256xi32>
      %135 = arith.shrui %133, %134 : vector<16x256xi32>
      %136 = arith.uitofp %135 : vector<16x256xi32> to vector<16x256xf32>
      %cst_51 = arith.constant 5.96046448E-8 : f32
      %137 = vector.broadcast %cst_51 : f32 to vector<16x256xf32>
      %138 = arith.mulf %136, %137 : vector<16x256xf32>
      %139 = arith.addf %118, %138 : vector<16x256xf32>
      %c-1640531527_i32_52 = arith.constant -1640531527 : i32
      %140 = vector.broadcast %c-1640531527_i32_52 : i32 to vector<16x256xi32>
      %141 = arith.addi %133, %140 : vector<16x256xi32>
      %c16_i32_53 = arith.constant 16 : i32
      %142 = vector.broadcast %c16_i32_53 : i32 to vector<16x256xi32>
      %143 = arith.shrui %141, %142 : vector<16x256xi32>
      %144 = arith.xori %141, %143 : vector<16x256xi32>
      %c2146121005_i32_54 = arith.constant 2146121005 : i32
      %145 = vector.broadcast %c2146121005_i32_54 : i32 to vector<16x256xi32>
      %146 = arith.muli %144, %145 : vector<16x256xi32>
      %c15_i32_55 = arith.constant 15 : i32
      %147 = vector.broadcast %c15_i32_55 : i32 to vector<16x256xi32>
      %148 = arith.shrui %146, %147 : vector<16x256xi32>
      %149 = arith.xori %146, %148 : vector<16x256xi32>
      %c-2073254261_i32_56 = arith.constant -2073254261 : i32
      %150 = vector.broadcast %c-2073254261_i32_56 : i32 to vector<16x256xi32>
      %151 = arith.muli %149, %150 : vector<16x256xi32>
      %c16_i32_57 = arith.constant 16 : i32
      %152 = vector.broadcast %c16_i32_57 : i32 to vector<16x256xi32>
      %153 = arith.shrui %151, %152 : vector<16x256xi32>
      %154 = arith.xori %151, %153 : vector<16x256xi32>
      %c8_i32_58 = arith.constant 8 : i32
      %155 = vector.broadcast %c8_i32_58 : i32 to vector<16x256xi32>
      %156 = arith.shrui %154, %155 : vector<16x256xi32>
      %157 = arith.uitofp %156 : vector<16x256xi32> to vector<16x256xf32>
      %cst_59 = arith.constant 5.96046448E-8 : f32
      %158 = vector.broadcast %cst_59 : f32 to vector<16x256xf32>
      %159 = arith.mulf %157, %158 : vector<16x256xf32>
      %160 = arith.addf %139, %159 : vector<16x256xf32>
      %c-1640531527_i32_60 = arith.constant -1640531527 : i32
      %161 = vector.broadcast %c-1640531527_i32_60 : i32 to vector<16x256xi32>
      %162 = arith.addi %154, %161 : vector<16x256xi32>
      %c16_i32_61 = arith.constant 16 : i32
      %163 = vector.broadcast %c16_i32_61 : i32 to vector<16x256xi32>
      %164 = arith.shrui %162, %163 : vector<16x256xi32>
      %165 = arith.xori %162, %164 : vector<16x256xi32>
      %c2146121005_i32_62 = arith.constant 2146121005 : i32
      %166 = vector.broadcast %c2146121005_i32_62 : i32 to vector<16x256xi32>
      %167 = arith.muli %165, %166 : vector<16x256xi32>
      %c15_i32_63 = arith.constant 15 : i32
      %168 = vector.broadcast %c15_i32_63 : i32 to vector<16x256xi32>
      %169 = arith.shrui %167, %168 : vector<16x256xi32>
      %170 = arith.xori %167, %169 : vector<16x256xi32>
      %c-2073254261_i32_64 = arith.constant -2073254261 : i32
      %171 = vector.broadcast %c-2073254261_i32_64 : i32 to vector<16x256xi32>
      %172 = arith.muli %170, %171 : vector<16x256xi32>
      %c16_i32_65 = arith.constant 16 : i32
      %173 = vector.broadcast %c16_i32_65 : i32 to vector<16x256xi32>
      %174 = arith.shrui %172, %173 : vector<16x256xi32>
      %175 = arith.xori %172, %174 : vector<16x256xi32>
      %c8_i32_66 = arith.constant 8 : i32
      %176 = vector.broadcast %c8_i32_66 : i32 to vector<16x256xi32>
      %177 = arith.shrui %175, %176 : vector<16x256xi32>
      %178 = arith.uitofp %177 : vector<16x256xi32> to vector<16x256xf32>
      %cst_67 = arith.constant 5.96046448E-8 : f32
      %179 = vector.broadcast %cst_67 : f32 to vector<16x256xf32>
      %180 = arith.mulf %178, %179 : vector<16x256xf32>
      %181 = arith.addf %160, %180 : vector<16x256xf32>
      %cst_68 = arith.constant 3.000000e+00 : f32
      %182 = vector.broadcast %cst_68 : f32 to vector<16x256xf32>
      %183 = arith.subf %181, %182 : vector<16x256xf32>
      %cst_69 = arith.constant 1.41421354 : f32
      %184 = vector.broadcast %cst_69 : f32 to vector<16x256xf32>
      %185 = arith.mulf %183, %184 : vector<16x256xf32>
      %c0_70 = arith.constant 0 : index
      %c0_71 = arith.constant 0 : index
      %c0_72 = arith.constant 0 : index
      %186 = vector.load %arg8[%c0_70, %c0_71, %c0_72] : memref<1x16x256xf32, #tpu.memory_space<vmem>>, vector<1x16x256xf32>
      %187 = vector.shape_cast %186 : vector<1x16x256xf32> to vector<16x256xf32>
      %cst_73 = arith.constant 2.000000e-01 : f32
      %188 = vector.broadcast %cst_73 : f32 to vector<16x1xf32>
      %189 = arith.mulf %188, %44 : vector<16x1xf32>
      %190 = vector.broadcast %189 : vector<16x1xf32> to vector<16x256xf32>
      %191 = arith.mulf %190, %185 : vector<16x256xf32>
      %192 = arith.addf %187, %191 : vector<16x256xf32>
      %c0_74 = arith.constant 0 : index
      %c0_75 = arith.constant 0 : index
      %c0_76 = arith.constant 0 : index
      %193 = vector.load %arg8[%c0_74, %c0_75, %c0_76] : memref<1x16x256xf32, #tpu.memory_space<vmem>>, vector<1x16x256xf32>
      %194 = vector.shape_cast %193 : vector<1x16x256xf32> to vector<16x256xf32>
      %195 = vector.shape_cast %192 : vector<16x256xf32> to vector<1x16x256xf32>
      tpu.vector_store %arg8[%c0_74, %c0_75, %c0_76], %195 {strides = array<i32>} : memref<1x16x256xf32, #tpu.memory_space<vmem>>, vector<1x16x256xf32>,
    } else {
    }
    %c0_i32_16 = arith.constant 0 : i32
    %28 = arith.addi %c0_i32_16, %17 : i32
    %c0_i32_17 = arith.constant 0 : i32
    %29 = arith.cmpi sgt, %28, %c0_i32_17 : i32
    %30 = arith.extui %29 : i1 to i32
    %c0_i32_18 = arith.constant 0 : i32
    %31 = arith.cmpi ne, %30, %c0_i32_18 : i32
    scf.if %31 {
      %cst = arith.constant 0.000000e+00 : f32
      %36 = vector.broadcast %cst : f32 to vector<16x1xf32>
      %c0_i32_22 = arith.constant 0 : i32
      %37 = vector.broadcast %c0_i32_22 : i32 to vector<16x1xi32>
      %38 = arith.cmpi sge, %5, %37 : vector<16x1xi32>
      %c16_i32 = arith.constant 16 : i32
      %39 = vector.broadcast %c16_i32 : i32 to vector<16x1xi32>
      %40 = arith.cmpi slt, %5, %39 : vector<16x1xi32>
      %41 = arith.andi %38, %40 : vector<16x1xi1>
      %42 = arith.sitofp %17 : i32 to f32
      %43 = vector.broadcast %42 : f32 to vector<16x1xf32>
      %44 = arith.select %41, %43, %36 : vector<16x1xi1>, vector<16x1xf32>
      %c0_23 = arith.constant 0 : index
      %c0_24 = arith.constant 0 : index
      %c0_25 = arith.constant 0 : index
      %45 = vector.load %arg8[%c0_23, %c0_24, %c0_25] : memref<1x16x256xf32, #tpu.memory_space<vmem>>, vector<1x16x256xf32>
      %46 = vector.shape_cast %45 : vector<1x16x256xf32> to vector<16x256xf32>
      %47 = arith.truncf %46 : vector<16x256xf32> to vector<16x256xbf16>
      %c0_26 = arith.constant 0 : index
      %c0_27 = arith.constant 0 : index
      %48 = vector.load %arg4[%c0_26, %c0_27] : memref<16x16xbf16, #tpu.memory_space<vmem>>, vector<16x16xbf16>
      %cst_28 = arith.constant dense<0.000000e+00> : vector<16x256xf32>
      %49 = tpu.matmul %48, %47, %cst_28 {dimension_numbers = #tpu.dot_dimension_numbers<[1], [0], [0], [1], [0, 0, 1, 1], [], []>} : vector<16x16xbf16>, vector<16x256xbf16>, vector<16x256xf32> -> vector<16x256xf32>
      %50 = arith.truncf %49 : vector<16x256xf32> to vector<16x256xbf16>
      %c0_29 = arith.constant 0 : index
      %c0_30 = arith.constant 0 : index
      %51 = vector.load %arg5[%c0_29, %c0_30] : memref<256x256xbf16, #tpu.memory_space<vmem>>, vector<256x256xbf16>
      %cst_31 = arith.constant dense<0.000000e+00> : vector<16x256xf32>
      %52 = tpu.matmul %50, %51, %cst_31 {dimension_numbers = #tpu.dot_dimension_numbers<[1], [0], [0], [1], [0, 0, 1, 1], [], []>} : vector<16x256xbf16>, vector<256x256xbf16>, vector<16x256xf32> -> vector<16x256xf32>
      %c0_32 = arith.constant 0 : index
      %c0_33 = arith.constant 0 : index
      %53 = vector.load %arg6[%c0_32, %c0_33] : memref<16x16xbf16, #tpu.memory_space<vmem>>, vector<16x16xbf16>
      %cst_34 = arith.constant dense<0.000000e+00> : vector<16x256xf32>
      %54 = tpu.matmul %53, %47, %cst_34 {dimension_numbers = #tpu.dot_dimension_numbers<[1], [0], [0], [1], [0, 0, 1, 1], [], []>} : vector<16x16xbf16>, vector<16x256xbf16>, vector<16x256xf32> -> vector<16x256xf32>
      %55 = arith.truncf %54 : vector<16x256xf32> to vector<16x256xbf16>
      %c0_35 = arith.constant 0 : index
      %c0_36 = arith.constant 0 : index
      %56 = vector.load %arg7[%c0_35, %c0_36] : memref<256x256xbf16, #tpu.memory_space<vmem>>, vector<256x256xbf16>
      %cst_37 = arith.constant dense<0.000000e+00> : vector<16x256xf32>
      %57 = tpu.matmul %55, %56, %cst_37 {dimension_numbers = #tpu.dot_dimension_numbers<[1], [0], [0], [1], [0, 0, 1, 1], [], []>} : vector<16x256xbf16>, vector<256x256xbf16>, vector<16x256xf32> -> vector<16x256xf32>
      %58 = arith.subf %52, %57 : vector<16x256xf32>
      %59 = arith.subf %58, %46 : vector<16x256xf32>
      %60 = vector.broadcast %44 : vector<16x1xf32> to vector<16x256xf32>
      %61 = arith.mulf %60, %59 : vector<16x256xf32>
      %62 = arith.addf %46, %61 : vector<16x256xf32>
      %c0_38 = arith.constant 0 : index
      %c0_39 = arith.constant 0 : index
      %c0_40 = arith.constant 0 : index
      %63 = vector.load %arg8[%c0_38, %c0_39, %c0_40] : memref<1x16x256xf32, #tpu.memory_space<vmem>>, vector<1x16x256xf32>
      %64 = vector.shape_cast %63 : vector<1x16x256xf32> to vector<16x256xf32>
      %65 = vector.shape_cast %62 : vector<16x256xf32> to vector<1x16x256xf32>
      tpu.vector_store %arg8[%c0_38, %c0_39, %c0_40], %65 {strides = array<i32>} : memref<1x16x256xf32, #tpu.memory_space<vmem>>, vector<1x16x256xf32>,
    } else {
    }
    %c0_i32_19 = arith.constant 0 : i32
    %32 = arith.addi %c0_i32_19, %23 : i32
    %c0_i32_20 = arith.constant 0 : i32
    %33 = arith.cmpi sgt, %32, %c0_i32_20 : i32
    %34 = arith.extui %33 : i1 to i32
    %c0_i32_21 = arith.constant 0 : i32
    %35 = arith.cmpi ne, %34, %c0_i32_21 : i32
    scf.if %35 {
      %cst = arith.constant 0.000000e+00 : f32
      %36 = vector.broadcast %cst : f32 to vector<16x1xf32>
      %c0_i32_22 = arith.constant 0 : i32
      %37 = vector.broadcast %c0_i32_22 : i32 to vector<16x1xi32>
      %38 = arith.cmpi sge, %5, %37 : vector<16x1xi32>
      %c16_i32 = arith.constant 16 : i32
      %39 = vector.broadcast %c16_i32 : i32 to vector<16x1xi32>
      %40 = arith.cmpi slt, %5, %39 : vector<16x1xi32>
      %41 = arith.andi %38, %40 : vector<16x1xi1>
      %42 = arith.sitofp %23 : i32 to f32
      %43 = vector.broadcast %42 : f32 to vector<16x1xf32>
      %44 = arith.select %41, %43, %36 : vector<16x1xi1>, vector<16x1xf32>
      %c0_23 = arith.constant 0 : index
      %c0_24 = arith.constant 0 : index
      %c0_25 = arith.constant 0 : index
      %45 = vector.load %arg8[%c0_23, %c0_24, %c0_25] : memref<1x16x256xf32, #tpu.memory_space<vmem>>, vector<1x16x256xf32>
      %46 = vector.shape_cast %45 : vector<1x16x256xf32> to vector<16x256xf32>
      %47 = vector.shape_cast %46 : vector<16x256xf32> to vector<1x16x256xf32>
      %cst_26 = arith.constant dense<0x7F800000> : vector<1x16xf32>
      %48 = vector.multi_reduction <minimumf>, %47, %cst_26 [2] : vector<1x16x256xf32> to vector<1x16xf32>
      %49 = vector.shape_cast %48 : vector<1x16xf32> to vector<1x16x1xf32>
      %cst_27 = arith.constant dense<0x7F800000> : vector<1x1xf32>
      %50 = vector.multi_reduction <minimumf>, %49, %cst_27 [1] : vector<1x16x1xf32> to vector<1x1xf32>
      %51 = vector.shape_cast %50 : vector<1x1xf32> to vector<1x1x1xf32>
      %cst_28 = arith.constant dense<0xFF800000> : vector<1x16xf32>
      %52 = vector.multi_reduction <maximumf>, %47, %cst_28 [2] : vector<1x16x256xf32> to vector<1x16xf32>
      %53 = vector.shape_cast %52 : vector<1x16xf32> to vector<1x16x1xf32>
      %cst_29 = arith.constant dense<0xFF800000> : vector<1x1xf32>
      %54 = vector.multi_reduction <maximumf>, %53, %cst_29 [1] : vector<1x16x1xf32> to vector<1x1xf32>
      %55 = vector.shape_cast %54 : vector<1x1xf32> to vector<1x1x1xf32>
      %56 = arith.subf %55, %51 : vector<1x1x1xf32>
      %cst_30 = arith.constant 1.000000e-07 : f32
      %57 = vector.broadcast %cst_30 : f32 to vector<1x1x1xf32>
      %58 = arith.addf %56, %57 : vector<1x1x1xf32>
      %cst_31 = arith.constant 1.000000e+00 : f32
      %59 = vector.broadcast %cst_31 : f32 to vector<1x1x1xf32>
      %60 = arith.divf %59, %58 : vector<1x1x1xf32>
      %61 = vector.broadcast %51 : vector<1x1x1xf32> to vector<1x16x256xf32>
      %62 = arith.subf %47, %61 : vector<1x16x256xf32>
      %63 = vector.broadcast %60 : vector<1x1x1xf32> to vector<1x16x256xf32>
      %64 = arith.mulf %62, %63 : vector<1x16x256xf32>
      %cst_32 = arith.constant 0.000000e+00 : f32
      %65 = vector.broadcast %cst_32 : f32 to vector<1x16x256xf32>
      %66 = arith.cmpf ogt, %64, %65 : vector<1x16x256xf32>
      %cst_33 = arith.constant 1.000000e-30 : f32
      %67 = vector.broadcast %cst_33 : f32 to vector<1x16x256xf32>
      %68 = arith.maximumf %64, %67 : vector<1x16x256xf32>
      %69 = math.log %68 : vector<1x16x256xf32>
      %cst_34 = arith.constant 1.100000e+00 : f32
      %70 = vector.broadcast %cst_34 : f32 to vector<1x16x256xf32>
      %71 = arith.mulf %70, %69 : vector<1x16x256xf32>
      %72 = math.exp %71 : vector<1x16x256xf32>
      %cst_35 = arith.constant 0.000000e+00 : f32
      %73 = vector.broadcast %cst_35 : f32 to vector<1x16x256xf32>
      %74 = arith.select %66, %72, %73 : vector<1x16x256xi1>, vector<1x16x256xf32>
      %75 = vector.broadcast %56 : vector<1x1x1xf32> to vector<1x16x256xf32>
      %76 = arith.mulf %74, %75 : vector<1x16x256xf32>
      %77 = vector.broadcast %51 : vector<1x1x1xf32> to vector<1x16x256xf32>
      %78 = arith.addf %76, %77 : vector<1x16x256xf32>
      %79 = vector.shape_cast %78 : vector<1x16x256xf32> to vector<16x256xf32>
      %80 = arith.subf %79, %46 : vector<16x256xf32>
      %81 = vector.broadcast %44 : vector<16x1xf32> to vector<16x256xf32>
      %82 = arith.mulf %81, %80 : vector<16x256xf32>
      %83 = arith.addf %46, %82 : vector<16x256xf32>
      %c0_36 = arith.constant 0 : index
      %c0_37 = arith.constant 0 : index
      %c0_38 = arith.constant 0 : index
      %84 = vector.load %arg8[%c0_36, %c0_37, %c0_38] : memref<1x16x256xf32, #tpu.memory_space<vmem>>, vector<1x16x256xf32>
      %85 = vector.shape_cast %84 : vector<1x16x256xf32> to vector<16x256xf32>
      %86 = vector.shape_cast %83 : vector<16x256xf32> to vector<1x16x256xf32>
      tpu.vector_store %arg8[%c0_36, %c0_37, %c0_38], %86 {strides = array<i32>} : memref<1x16x256xf32, #tpu.memory_space<vmem>>, vector<1x16x256xf32>,
    } else {
    }
    return
  }
  func.func @transform_0(%arg0: i32) -> i32 {
    %c0_i32 = arith.constant 0 : i32
    %c0_i32_0 = arith.constant 0 : i32
    return %c0_i32 : i32
  }
  func.func @transform_1(%arg0: i32) -> i32 {
    %c0_i32 = arith.constant 0 : i32
    %c0_i32_0 = arith.constant 0 : i32
    return %c0_i32 : i32
  }
  func.func @transform_2(%arg0: i32) -> (i32, i32, i32) {
    %c0_i32 = arith.constant 0 : i32
    %c0_i32_0 = arith.constant 0 : i32
    %c0_i32_1 = arith.constant 0 : i32
    return %arg0, %c0_i32, %c0_i32_0 : i32, i32, i32
  }
  func.func @transform_3(%arg0: i32) -> (i32, i32) {
    %c0_i32 = arith.constant 0 : i32
    %c0_i32_0 = arith.constant 0 : i32
    %c0_i32_1 = arith.constant 0 : i32
    return %c0_i32, %c0_i32_0 : i32, i32
  }
  func.func @transform_4(%arg0: i32) -> (i32, i32) {
    %c0_i32 = arith.constant 0 : i32
    %c0_i32_0 = arith.constant 0 : i32
    %c0_i32_1 = arith.constant 0 : i32
    return %c0_i32, %c0_i32_0 : i32, i32
  }
  func.func @transform_5(%arg0: i32) -> (i32, i32) {
    %c0_i32 = arith.constant 0 : i32
    %c0_i32_0 = arith.constant 0 : i32
    %c0_i32_1 = arith.constant 0 : i32
    return %c0_i32, %c0_i32_0 : i32, i32
  }
  func.func @transform_6(%arg0: i32) -> (i32, i32) {
    %c0_i32 = arith.constant 0 : i32
    %c0_i32_0 = arith.constant 0 : i32
    %c0_i32_1 = arith.constant 0 : i32
    return %c0_i32, %c0_i32_0 : i32, i32
  }
  func.func @transform_7(%arg0: i32) -> (i32, i32, i32) {
    %c0_i32 = arith.constant 0 : i32
    %c0_i32_0 = arith.constant 0 : i32
    %c0_i32_1 = arith.constant 0 : i32
    return %arg0, %c0_i32, %c0_i32_0 : i32, i32, i32
  }
}

</mosaic_0001>

<bundles_post_ra>
// kernel: tpu_custom_call.1
= control target key start
LH: loop header
LB: loop body
LE: loop exit
PB: predicated region body
PF: predicated region fallthrough
CT: control target
= control target key end

     0   :  { %s2733_s0 = inlined_call_operand.vmem [shape: s32[6], index: 0, kind: input, shape index: {}]   ;;  %s2734_s1 = inlined_call_operand.<no memory space> [shape: s32[1], index: 1, kind: input, shape index: {}]   ;;  %s2735_s2 = inlined_call_operand.hbm [shape: f32[2,16,256], index: 2, kind: input, shape index: {}, may-alias: {2,7}]   ;;  %s2736_s3 = inlined_call_operand.vmem [shape: bf16[16,16], index: 3, kind: input, shape index: {}]   ;;  %s2737_s4 = inlined_call_operand.hbm [shape: bf16[256,256], index: 4, kind: input, shape index: {}]   ;;  %s2738_s5 = inlined_call_operand.vmem [shape: bf16[16,16], index: 5, kind: input, shape index: {}]   ;;  %s2739_s6 = inlined_call_operand.hbm [shape: bf16[256,256], index: 6, kind: input, shape index: {}]   ;;  %s2740_s7 = inlined_call_operand.hbm [shape: f32[2,16,256], index: 7, kind: output, shape index: {}, may-alias: {2,7}]  }
   0x1   :  { %12 = sst [smem:[#allocation2]] %s2734_s1 }
   0x2   :  { %13 = vsyncpa [#allocation6], 0 }
   0x3   :  { %14 = vsyncpa [#allocation4], 0 }
   0x4   :  { %16 = vsyncpa [#allocation4 + $0x1], 0 }
   0x5   :  { %17 = vsyncpa [#allocation9], 0 }
   0x6   :  { %18 = vsyncpa [#allocation5], 0 }
   0x7   :  { %20 = vsyncpa [#allocation5 + $0x1], 0  ;;  %s2412_s26 = smov 0   ;;  %s2414_s27 = smov 0  }
   0x8   :  { %s2416_s28 = smov 0   ;;  %s2418_s29 = smov 0  }
   0x9 LB: > { %s2433_s1 = sadd.s32 4294967295, %s2358_s29   ;;  %s1714_s30 = sadd.s32 4294967294, %s2358_s29   ;;  %s2358_s29 = sphi %s2418_s29, %s2751_s29   ;;  %s2354_s28 = sphi %s2416_s28, %s2750_s28   ;;  %s2350_s27 = sphi %s2414_s27, %s2749_s27   ;;  %s2346_s26 = sphi %s2412_s26, %s2748_s26  }
   0xa   : > { %p88_p0 = scmp.ne.s32.totalorder %s2350_s27, %s2346_s26  ;;  %p89_p1 = scmp.eq.s32.totalorder %s2433_s1, 0 }
   0xb   : > { %p196_p2 = scmp.eq.s32.totalorder %s2433_s1, 1  ;;  %p202_p3 = scmp.eq.s32.totalorder %s1714_s30, 1 }
   0xc   : > { %p2442_p4 = por %p89_p1, %p88_p0  ;;  %p1715_p5 = scmp.ge.s32.totalorder %s2358_s29, 1 }
   0xd   : > { %p2447_p6 = por %p202_p3, %p88_p0  ;;  %p209_p7 = scmp.lt.s32.totalorder %s2358_s29, 3 }
   0xe   : > { %s236_s12 = sshll.u32 %s2737_s4, 4  ;;  %s2360_s14 = smov [#allocation8]   ;;  %s237_s12 = int_to_ptr.hbm [resolvable:$true] %s236_s12 }
   0xf   : > { %p2455_p8 = pnand %p1715_p5, %p209_p7  ;;  %s238_s15 = sshll.u32 %s2360_s14, 4  ;;  %s239_s15 = int_to_ptr.vmem [resolvable:$true] %s238_s15 }
  0x10   : > { %s221_s19 = sshll.u32 %s2733_s0, 4  ;;  %s2361_s20 = smov 128   ;;  %s222_s19 = int_to_ptr.vmem [resolvable:$true] %s221_s19 }
  0x11   : > { %p2094_p9 = pneg %p2455_p8  ;;  %s2362_s21 = smov 8  }
  0x12   : > { %s2363_s22 = smov [#allocation3]   ;;  %s253_s25 = sshll.u32 %s2739_s6, 4  ;;  %s254_s25 = int_to_ptr.hbm [resolvable:$true] %s253_s25 }
  0x13   : > { %p2463_p10 = pnand %p2094_p9, %p89_p1  ;;  %s2364_s30 = smov [#allocation10]  }
  0x14   : > { %s255_s10 = sshll.u32 %s2364_s30, 4  ;;  %s2481_s11 = sadd.s32 1, %s2358_s29   ;;  %s256_s10 = int_to_ptr.vmem [resolvable:$true] %s255_s10 }
  0x15   : > { %2100 = dma.hbm_to_vmem [thread:$0]  (!%p2463_p10), %s237_s12, 4096, %s239_s15, [#allocation9], %s2361_s20, %s2361_s20, %s2362_s21  }
  0x16   : > { %2097 = dma.vmem_to_smem (!%p2463_p10), %s222_s19, 16, %s2363_s22, [#allocation6]  }
  0x17   : > { %2103 = dma.hbm_to_vmem [thread:$0]  (!%p2463_p10), %s254_s25, 4096, %s256_s10, [#allocation9], %s2361_s20, %s2361_s20, %s2362_s21  }
  0x18   : > { %s72_s12 = ssub.s32 %s2358_s29, %s2481_s11  ;;  %s75_s14 = sadd.s32 1, %s2354_s28 }
  0x19   : > { %p73_p12 = scmp.eq.s32.totalorder %s72_s12, 0  ;;  %p82_p13 = scmp.ne.s32.totalorder %s2354_s28, %s2350_s27 }
  0x1a   : > { %p83_p0 = scmp.eq.s32.totalorder %s2358_s29, 0  ;;  %p2115_p3 = scmp.lt.s32.totalorder %s2358_s29, 2 }
  0x1b   : > { %s2491_s15 = scalar_select %p73_p12, %s2354_s28, %s75_s14  }
  0x1c   : > { %p84_p5 = por %p83_p0, %p82_p13  ;;  %p2495_p7 = por %p196_p2, %p82_p13 }
  0x1d   : > { %s269_s16 = sand.u32 1, %s2354_s28   ;;  %s2010_s18 = sshll.u32 %s2358_s29, 5 }
  0x1e   : > { %s1720_s19 = sshll.u32 %s269_s16, 5  ;;  %s278_s22 = scalar_lea.hbm %s2735_s2, %s2010_s18 }
  0x1f   : > { %s279_s23 = sshll.u32 %s278_s22, 4  ;;  %s273_s24 = scalar_lea.vmem [#allocation7], %s1720_s19  ;;  %s280_s23 = int_to_ptr.hbm [resolvable:$true] %s279_s23 }
  0x20   : > { %s281_s25 = sshll.u32 %s273_s24, 4  ;;  %p2506_p9 = pnand %p2115_p3, %p84_p5  ;;  %s282_s25 = int_to_ptr.vmem [resolvable:$true] %s281_s25 }
  0x21   : > { %s270_s10 = scalar_lea.sflag [#allocation4], %s269_s16  ;;  %s2254_s12 = sshra.s32 %s280_s23, 4  ;;  %s2255_s12 = int_to_ptr.hbm [resolvable:$true] %s2254_s12 }
  0x22   : > { %s2256_s14 = scalar_lea.hbm %s2255_s12, 32  ;;  %p2258_p10 = pneg %p2506_p9 }
  0x23   : > { %p2257_p2 = scmp.ne.s32.totalorder %s2255_s12, %s2256_s14  ;;  %s2261_s20 = scalar_lea.hbm %s2735_s2, 64 }
  0x24   : > { %p2262_p0 = scmp.lt.s32.totalorder %s2255_s12, %s2735_s2  ;;  %p2263_p3 = scmp.lt.s32.totalorder %s2261_s20, %s2256_s14 }
  0x25   : > { %p2259_p12 = pnand %p2258_p10, %p2257_p2 }
  0x26   : > { %p2264_p5 = por %p2263_p3, %p2262_p0 }
  0x27   : > { %p2260_p13 = pneg %p2259_p12 }
  0x29   : > { %p2265_p11 = pnand %p2264_p5, %p2260_p13 }
  0x2b   : > { %2268 = shalt.err (!%p2265_p11)
}
  0x2c   : > { %s2365_s16 = smov 256   ;;  %s2366_s24 = smov 16  }
  0x2d   : > { %2107 = dma.hbm_to_vmem [thread:$0]  (!%p2506_p9), %s280_s23, 512, %s282_s25, %s270_s10, %s2365_s16, %s2365_s16, %s2366_s24  }
  0x2e   : > { %293 = sbr.rel (%p2455_p8) target bundleno = 903 (0x387), region = 48 }
  0x33   : > { %2329 = dma.done.wait (%p89_p1), [#allocation6], 16  }
  0x34   : > { %2331 = vsyncadd (%p89_p1), [#allocation6], 4294967280  ;;  %s2527_s12 = sand.u32 1, %s2350_s27  }
  0x35   : > { %s1725_s14 = sshll.u32 %s2527_s12, 5  ;;  %s301_s18 = scalar_lea.sflag [#allocation4], %s2527_s12 }
  0x36   : > { %s304_s19 = scalar_lea.vmem [#allocation7], %s1725_s14 }
  0x37   : > { %2333 = dma.done.wait (%p2442_p4), %s301_s18, 512  }
  0x38   : > { %2335 = vsyncadd (%p2442_p4), %s301_s18, 4294966784 }
  0x39   : > { %2337 = dma.done.wait (%p89_p1), [#allocation9], 8192  }
  0x3a   : > { %2339 = vsyncadd (%p89_p1), [#allocation9], 4294959104 }
  0x3b   : > { %320 = sfence }
  0x3c   : > { %v348_v0 = vld [vmem:[%s304_s19] sm:$0xff]  ;;  %v349_v1 = vld [vmem:[%s304_s19 + $0x8] sm:$0xff]  ;;  %v350_v2 = vld [vmem:[%s304_s19 + $0x10] sm:$0xff]  ;;  %v356_v3 = vlaneseq  ;;  %s359_s13 = smul.u32 3, %s2433_s1  ;;  %s2540_s23 = scalar_lea.vmem [#allocation11], %s1725_s14 }
  0x3d   : > { %352 = vst [vmem:[%s2540_s23] sm:$0xff] %v348_v0  ;;  %v351_v4 = vld [vmem:[%s304_s19 + $0x18] sm:$0xff] }
  0x3e   : > { %353 = vst [vmem:[%s2540_s23 + $0x8] sm:$0xff] %v349_v1  ;;  %v357_v5 = vshrl.u32 %v356_v3, 7  ;;  %s2544_s8 = sld [smem:[#allocation3 + %s359_s13]]  ;;  %s361_s25 = sadd.s32 1, %s359_s13 }
  0x3f   : > { %354 = vst [vmem:[%s2540_s23 + $0x10] sm:$0xff] %v350_v2  ;;  %s2547_s30 = sld [smem:[#allocation3 + %s361_s25]]  ;;  %s363_s10 = sadd.s32 2, %s359_s13 }
  0x40   : > { %355 = vst [vmem:[%s2540_s23 + $0x18] sm:$0xff] %v351_v4  ;;  %v358_v6 = vadd.s32 8, %v357_v5  ;;  %s2550_s20 = sld [smem:[#allocation3 + %s363_s10]] }
  0x44   : > { %p1729_p1 = scmp.le.s32.totalorder %s2544_s8, 0 }
  0x45   : > { %s379_s21 = sld [smem:[#allocation2]] (!%p1729_p1)  ;;  %s1730_s22 = sshll.u32 (!%p1729_p1), %s2433_s1, 12 }
  0x46   : > { %368 = sbr.rel (%p1729_p1) target bundleno = 220 (0xdc), region = 68  ;;  %s375_s24 = scvt.s32.f32 (!%p1729_p1), %s2544_s8 }
  0x4b   : > { %v381_v7 = vand.u32 127, %v356_v3  ;;  %v385_v8 = vmul.u32 256, %v357_v5  ;;  %v386_v9 = vmul.u32 256, %v358_v6  ;;  %s384_s16 = sadd.s32 %s1730_s22, %s379_s21 }
  0x4c   : > { %v387_v11 = vstv %s384_s16 }
  0x4d   : > { %v382_v10 = vadd.s32 128, %v381_v7  ;;  %v388_v12 = vadd.s32 %v387_v11, %v385_v8  ;;  %v389_v13 = vadd.s32 %v387_v11, %v386_v9 }
  0x4f   : > { %v390_v14 = vadd.s32 %v388_v12, %v381_v7  ;;  %v391_v15 = vadd.s32 %v388_v12, %v382_v10  ;;  %v392_v16 = vadd.s32 %v389_v13, %v381_v7  ;;  %v393_v17 = vadd.s32 %v389_v13, %v382_v10 }
  0x51   : > { %v394_v18 = vadd.s32 2654435769, %v390_v14  ;;  %v395_v19 = vadd.s32 2654435769, %v391_v15  ;;  %v396_v20 = vadd.s32 2654435769, %v392_v16 }
  0x52   : > { %v397_v21 = vadd.s32 2654435769, %v393_v17 }
  0x53   : > { %v398_v22 = vshrl.u32 %v394_v18, 16  ;;  %v399_v23 = vshrl.u32 %v395_v19, 16  ;;  %v400_v24 = vshrl.u32 %v396_v20, 16 }
  0x54   : > { %v401_v25 = vshrl.u32 %v397_v21, 16 }
  0x55   : > { %v402_v26 = vxor.u32 %v398_v22, %v394_v18  ;;  %v403_v27 = vxor.u32 %v399_v23, %v395_v19  ;;  %v404_v28 = vxor.u32 %v400_v24, %v396_v20 }
  0x56   : > { %v405_v29 = vxor.u32 %v401_v25, %v397_v21 }
  0x57   : > { %v406_v30 = vmul.u32 2146121005, %v402_v26  ;;  %v407_v31 = vmul.u32 2146121005, %v403_v27  ;;  %v408_v32 = vmul.u32 2146121005, %v404_v28 }
  0x58   : > { %v409_v33 = vmul.u32 2146121005, %v405_v29 }
  0x59   : > { %v410_v34 = vshrl.u32 %v406_v30, 15  ;;  %v411_v35 = vshrl.u32 %v407_v31, 15  ;;  %v412_v36 = vshrl.u32 %v408_v32, 15 }
  0x5a   : > { %v413_v37 = vshrl.u32 %v409_v33, 15 }
  0x5b   : > { %v414_v38 = vxor.u32 %v410_v34, %v406_v30  ;;  %v415_v39 = vxor.u32 %v411_v35, %v407_v31  ;;  %v416_v40 = vxor.u32 %v412_v36, %v408_v32 }
  0x5c   : > { %v417_v41 = vxor.u32 %v413_v37, %v409_v33 }
  0x5d   : > { %v418_v42 = vmul.u32 2221713035, %v414_v38  ;;  %v419_v43 = vmul.u32 2221713035, %v415_v39  ;;  %v420_v44 = vmul.u32 2221713035, %v416_v40 }
  0x5e   : > { %v421_v45 = vmul.u32 2221713035, %v417_v41 }
  0x5f   : > { %v422_v46 = vshrl.u32 %v418_v42, 16  ;;  %v423_v47 = vshrl.u32 %v419_v43, 16  ;;  %v424_v48 = vshrl.u32 %v420_v44, 16 }
  0x60   : > { %v425_v49 = vshrl.u32 %v421_v45, 16 }
  0x61   : > { %v426_v50 = vxor.u32 %v422_v46, %v418_v42  ;;  %v427_v51 = vxor.u32 %v423_v47, %v419_v43  ;;  %v428_v52 = vxor.u32 %v424_v48, %v420_v44 }
  0x62   : > { %v429_v53 = vxor.u32 %v425_v49, %v421_v45 }
  0x63   : > { %v430_v54 = vshrl.u32 %v426_v50, 8  ;;  %v431_v55 = vshrl.u32 %v427_v51, 8  ;;  %v432_v56 = vshrl.u32 %v428_v52, 8  ;;  %v466_v58 = vadd.s32 2654435769, %v426_v50 }
  0x64   : > { %v433_v57 = vshrl.u32 %v429_v53, 8  ;;  %v467_v59 = vadd.s32 2654435769, %v427_v51  ;;  %v468_v60 = vadd.s32 2654435769, %v428_v52 }
  0x65   : > { %v434_v61 = vshrl.u32 %v430_v54, 16  ;;  %v440_v62 = vshrl.u32 %v431_v55, 16  ;;  %v446_v63 = vshrl.u32 %v432_v56, 16  ;;  %v469_v1 = vadd.s32 2654435769, %v429_v53 }
  0x66   : > { %v452_v0 = vshrl.u32 %v433_v57, 16  ;;  %v470_v2 = vshrl.u32 %v466_v58, 16  ;;  %v435_v3 = vand.u32 65535, %v430_v54  ;;  %v441_v4 = vand.u32 65535, %v431_v55 }
  0x67   : > { %v471_v5 = vshrl.u32 %v467_v59, 16  ;;  %v472_v6 = vshrl.u32 %v468_v60, 16  ;;  %v436_v7 = vcvt.s32.f32 %v434_v61  ;;  %v447_v8 = vand.u32 65535, %v432_v56 }
  0x68   : > { %v473_v9 = vshrl.u32 %v469_v1, 16  ;;  %v474_v10 = vxor.u32 %v470_v2, %v466_v58  ;;  %v442_v11 = vcvt.s32.f32 %v440_v62  ;;  %v448_v12 = vcvt.s32.f32 %v446_v63 }
  0x69   : > { %v475_v13 = vxor.u32 %v471_v5, %v467_v59  ;;  %v476_v14 = vxor.u32 %v472_v6, %v468_v60  ;;  %v453_v15 = vand.u32 65535, %v433_v57  ;;  %v454_v16 = vcvt.s32.f32 %v452_v0 }
  0x6a   : > { %v477_v17 = vxor.u32 %v473_v9, %v469_v1  ;;  %v478_v18 = vmul.u32 2146121005, %v474_v10  ;;  %v438_v19 = vcvt.s32.f32 %v435_v3  ;;  %v444_v20 = vcvt.s32.f32 %v441_v4 }
  0x6b   : > { %v479_v21 = vmul.u32 2146121005, %v475_v13  ;;  %v480_v22 = vmul.u32 2146121005, %v476_v14  ;;  %v437_v23 = vmul.f32 65536.0, %v436_v7  ;;  %v450_v24 = vcvt.s32.f32 %v447_v8 }
  0x6c   : > { %v481_v25 = vmul.u32 2146121005, %v477_v17  ;;  %v482_v26 = vshrl.u32 %v478_v18, 15  ;;  %v443_v27 = vmul.f32 65536.0, %v442_v11  ;;  %v449_v28 = vmul.f32 65536.0, %v448_v12 }
  0x6d   : > { %v483_v29 = vshrl.u32 %v479_v21, 15  ;;  %v484_v30 = vshrl.u32 %v480_v22, 15  ;;  %v455_v31 = vmul.f32 65536.0, %v454_v16  ;;  %v456_v32 = vcvt.s32.f32 %v453_v15 }
  0x6e   : > { %v485_v33 = vshrl.u32 %v481_v25, 15  ;;  %v486_v34 = vxor.u32 %v482_v26, %v478_v18  ;;  %v439_v37 = vadd.f32 %v438_v19, %v437_v23  ;;  %v445_v40 = vadd.f32 %v444_v20, %v443_v27 }
  0x6f   : > { %v487_v35 = vxor.u32 %v483_v29, %v479_v21  ;;  %v488_v36 = vxor.u32 %v484_v30, %v480_v22  ;;  %v451_v41 = vadd.f32 %v450_v24, %v449_v28  ;;  %v457_v44 = vadd.f32 %v456_v32, %v455_v31 }
  0x70   : > { %v489_v38 = vxor.u32 %v485_v33, %v481_v25  ;;  %v490_v39 = vmul.u32 2221713035, %v486_v34  ;;  %v458_v49 = vmul.f32 5.9604645e-08, %v439_v37  ;;  %v459_v52 = vmul.f32 5.9604645e-08, %v445_v40 }
  0x71   : > { %v491_v42 = vmul.u32 2221713035, %v487_v35  ;;  %v492_v43 = vmul.u32 2221713035, %v488_v36  ;;  %v460_v53 = vmul.f32 5.9604645e-08, %v451_v41  ;;  %v461_v56 = vmul.f32 5.9604645e-08, %v457_v44 }
  0x72   : > { %v493_v45 = vmul.u32 2221713035, %v489_v38  ;;  %v494_v46 = vshrl.u32 %v490_v39, 16 }
  0x73   : > { %v495_v47 = vshrl.u32 %v491_v42, 16  ;;  %v496_v48 = vshrl.u32 %v492_v43, 16 }
  0x74   : > { %v497_v50 = vshrl.u32 %v493_v45, 16  ;;  %v498_v51 = vxor.u32 %v494_v46, %v490_v39 }
  0x75   : > { %v499_v54 = vxor.u32 %v495_v47, %v491_v42  ;;  %v500_v55 = vxor.u32 %v496_v48, %v492_v43 }
  0x76   : > { %v501_v57 = vxor.u32 %v497_v50, %v493_v45  ;;  %v502_v58 = vshrl.u32 %v498_v51, 8  ;;  %v538_v59 = vadd.s32 2654435769, %v498_v51 }
  0x77   : > { %v503_v60 = vshrl.u32 %v499_v54, 8  ;;  %v504_v61 = vshrl.u32 %v500_v55, 8  ;;  %v539_v62 = vadd.s32 2654435769, %v499_v54  ;;  %v540_v63 = vadd.s32 2654435769, %v500_v55 }
  0x78   : > { %v505_v0 = vshrl.u32 %v501_v57, 8  ;;  %v506_v1 = vshrl.u32 %v502_v58, 16  ;;  %v507_v2 = vand.u32 65535, %v502_v58  ;;  %v541_v3 = vadd.s32 2654435769, %v501_v57 }
  0x79   : > { %v512_v4 = vshrl.u32 %v503_v60, 16  ;;  %v513_v5 = vand.u32 65535, %v503_v60  ;;  %v518_v6 = vshrl.u32 %v504_v61, 16  ;;  %v519_v7 = vand.u32 65535, %v504_v61 }
  0x7a   : > { %v508_v8 = vcvt.s32.f32 %v506_v1  ;;  %v510_v9 = vcvt.s32.f32 %v507_v2  ;;  %v524_v10 = vshrl.u32 %v505_v0, 16  ;;  %v525_v11 = vand.u32 65535, %v505_v0 }
  0x7b   : > { %v514_v12 = vcvt.s32.f32 %v512_v4  ;;  %v516_v13 = vcvt.s32.f32 %v513_v5  ;;  %v520_v14 = vcvt.s32.f32 %v518_v6  ;;  %v522_v15 = vcvt.s32.f32 %v519_v7 }
  0x7c   : > { %v509_v16 = vmul.f32 65536.0, %v508_v8  ;;  %v526_v17 = vcvt.s32.f32 %v524_v10  ;;  %v528_v18 = vcvt.s32.f32 %v525_v11  ;;  %v542_v19 = vshrl.u32 %v538_v59, 16 }
  0x7d   : > { %v515_v20 = vmul.f32 65536.0, %v514_v12  ;;  %v521_v21 = vmul.f32 65536.0, %v520_v14  ;;  %v543_v22 = vshrl.u32 %v539_v62, 16  ;;  %v544_v23 = vshrl.u32 %v540_v63, 16 }
  0x7e   : > { %v511_v24 = vadd.f32 %v510_v9, %v509_v16  ;;  %v527_v25 = vmul.f32 65536.0, %v526_v17  ;;  %v545_v26 = vshrl.u32 %v541_v3, 16  ;;  %v546_v27 = vxor.u32 %v542_v19, %v538_v59 }
  0x7f   : > { %v517_v28 = vadd.f32 %v516_v13, %v515_v20  ;;  %v523_v29 = vadd.f32 %v522_v15, %v521_v21  ;;  %v547_v30 = vxor.u32 %v543_v22, %v539_v62  ;;  %v548_v31 = vxor.u32 %v544_v23, %v540_v63 }
  0x80   : > { %v529_v32 = vadd.f32 %v528_v18, %v527_v25  ;;  %v530_v33 = vmul.f32 5.9604645e-08, %v511_v24  ;;  %v549_v34 = vxor.u32 %v545_v26, %v541_v3  ;;  %v550_v35 = vmul.u32 2146121005, %v546_v27 }
  0x81   : > { %v531_v36 = vmul.f32 5.9604645e-08, %v517_v28  ;;  %v532_v37 = vmul.f32 5.9604645e-08, %v523_v29  ;;  %v551_v38 = vmul.u32 2146121005, %v547_v30  ;;  %v552_v39 = vmul.u32 2146121005, %v548_v31 }
  0x82   : > { %v533_v40 = vmul.f32 5.9604645e-08, %v529_v32  ;;  %v2554_v41 = vadd.f32 %v530_v33, %v458_v49  ;;  %v553_v42 = vmul.u32 2146121005, %v549_v34  ;;  %v554_v43 = vshrl.u32 %v550_v35, 15 }
  0x83   : > { %v2556_v44 = vadd.f32 %v531_v36, %v459_v52  ;;  %v2558_v45 = vadd.f32 %v532_v37, %v460_v53  ;;  %v555_v46 = vshrl.u32 %v551_v38, 15  ;;  %v556_v47 = vshrl.u32 %v552_v39, 15 }
  0x84   : > { %v2560_v48 = vadd.f32 %v533_v40, %v461_v56  ;;  %v557_v50 = vshrl.u32 %v553_v42, 15  ;;  %v558_v51 = vxor.u32 %v554_v43, %v550_v35 }
  0x85   : > { %v559_v54 = vxor.u32 %v555_v46, %v551_v38  ;;  %v560_v55 = vxor.u32 %v556_v47, %v552_v39 }
  0x86   : > { %v561_v57 = vxor.u32 %v557_v50, %v553_v42  ;;  %v562_v58 = vmul.u32 2221713035, %v558_v51 }
  0x87   : > { %v563_v59 = vmul.u32 2221713035, %v559_v54  ;;  %v564_v60 = vmul.u32 2221713035, %v560_v55 }
  0x88   : > { %v565_v49 = vmul.u32 2221713035, %v561_v57  ;;  %v566_v61 = vshrl.u32 %v562_v58, 16 }
  0x89   : > { %v567_v62 = vshrl.u32 %v563_v59, 16  ;;  %v568_v63 = vshrl.u32 %v564_v60, 16 }
  0x8a   : > { %v569_v52 = vshrl.u32 %v565_v49, 16  ;;  %v570_v0 = vxor.u32 %v566_v61, %v562_v58 }
  0x8b   : > { %v571_v53 = vxor.u32 %v567_v62, %v563_v59  ;;  %v572_v1 = vxor.u32 %v568_v63, %v564_v60 }
  0x8c   : > { %v573_v2 = vxor.u32 %v569_v52, %v565_v49  ;;  %v610_v3 = vadd.s32 2654435769, %v570_v0  ;;  %v574_v29 = vshrl.u32 %v570_v0, 8 }
  0x8d   : > { %v611_v56 = vadd.s32 2654435769, %v571_v53  ;;  %v612_v4 = vadd.s32 2654435769, %v572_v1  ;;  %v575_v32 = vshrl.u32 %v571_v53, 8  ;;  %v576_v35 = vshrl.u32 %v572_v1, 8 }
  0x8e   : > { %v613_v5 = vadd.s32 2654435769, %v573_v2  ;;  %v614_v6 = vshrl.u32 %v610_v3, 16  ;;  %v577_v38 = vshrl.u32 %v573_v2, 8  ;;  %v578_v42 = vshrl.u32 %v574_v29, 16 }
  0x8f   : > { %v615_v7 = vshrl.u32 %v611_v56, 16  ;;  %v616_v8 = vshrl.u32 %v612_v4, 16  ;;  %v584_v46 = vshrl.u32 %v575_v32, 16  ;;  %v579_v47 = vand.u32 65535, %v574_v29 }
  0x90   : > { %v617_v9 = vshrl.u32 %v613_v5, 16  ;;  %v618_v10 = vxor.u32 %v614_v6, %v610_v3  ;;  %v590_v50 = vshrl.u32 %v576_v35, 16  ;;  %v585_v54 = vand.u32 65535, %v575_v32 }
  0x91   : > { %v619_v11 = vxor.u32 %v615_v7, %v611_v56  ;;  %v620_v12 = vxor.u32 %v616_v8, %v612_v4  ;;  %v596_v55 = vshrl.u32 %v577_v38, 16  ;;  %v580_v59 = vcvt.s32.f32 %v578_v42 }
  0x92   : > { %v621_v13 = vxor.u32 %v617_v9, %v613_v5  ;;  %v622_v14 = vmul.u32 2146121005, %v618_v10  ;;  %v591_v60 = vand.u32 65535, %v576_v35  ;;  %v586_v61 = vcvt.s32.f32 %v584_v46 }
  0x93   : > { %v623_v15 = vmul.u32 2146121005, %v619_v11  ;;  %v624_v16 = vmul.u32 2146121005, %v620_v12  ;;  %v597_v62 = vand.u32 65535, %v577_v38  ;;  %v582_v63 = vcvt.s32.f32 %v579_v47 }
  0x94   : > { %v625_v17 = vmul.u32 2146121005, %v621_v13  ;;  %v626_v18 = vshrl.u32 %v622_v14, 15  ;;  %v592_v52 = vcvt.s32.f32 %v590_v50  ;;  %v588_v53 = vcvt.s32.f32 %v585_v54 }
  0x95   : > { %v627_v19 = vshrl.u32 %v623_v15, 15  ;;  %v628_v20 = vshrl.u32 %v624_v16, 15  ;;  %v598_v1 = vcvt.s32.f32 %v596_v55  ;;  %v581_v56 = vmul.f32 65536.0, %v580_v59 }
  0x96   : > { %v629_v21 = vshrl.u32 %v625_v17, 15  ;;  %v630_v22 = vxor.u32 %v626_v18, %v622_v14  ;;  %v594_v4 = vcvt.s32.f32 %v591_v60  ;;  %v587_v7 = vmul.f32 65536.0, %v586_v61 }
  0x97   : > { %v631_v23 = vxor.u32 %v627_v19, %v623_v15  ;;  %v632_v24 = vxor.u32 %v628_v20, %v624_v16  ;;  %v600_v8 = vcvt.s32.f32 %v597_v62  ;;  %v593_v11 = vmul.f32 65536.0, %v592_v52 }
  0x98   : > { %v633_v25 = vxor.u32 %v629_v21, %v625_v17  ;;  %v634_v26 = vmul.u32 2221713035, %v630_v22  ;;  %v599_v15 = vmul.f32 65536.0, %v598_v1 }
  0x99   : > { %v635_v27 = vmul.u32 2221713035, %v631_v23  ;;  %v636_v28 = vmul.u32 2221713035, %v632_v24  ;;  %v583_v23 = vadd.f32 %v582_v63, %v581_v56  ;;  %v589_v24 = vadd.f32 %v588_v53, %v587_v7 }
  0x9a   : > { %v637_v30 = vmul.u32 2221713035, %v633_v25  ;;  %v638_v31 = vshrl.u32 %v634_v26, 16 }
  0x9b   : > { %v639_v33 = vshrl.u32 %v635_v27, 16  ;;  %v640_v34 = vshrl.u32 %v636_v28, 16  ;;  %v602_v62 = vmul.f32 5.9604645e-08, %v583_v23  ;;  %v603_v63 = vmul.f32 5.9604645e-08, %v589_v24 }
  0x9c   : > { %v641_v36 = vshrl.u32 %v637_v30, 16  ;;  %v642_v37 = vxor.u32 %v638_v31, %v634_v26  ;;  %v601_v31 = vadd.f32 %v600_v8, %v599_v15 }
  0x9d   : > { %v643_v39 = vxor.u32 %v639_v33, %v635_v27  ;;  %v2562_v40 = vxor.u32 %v640_v34, %v636_v28  ;;  %v595_v27 = vadd.f32 %v594_v4, %v593_v11  ;;  %v2571_v15 = vadd.f32 %v602_v62, %v2554_v41 }
  0x9e   : > { %v2564_v43 = vxor.u32 %v641_v36, %v637_v30  ;;  %v682_v51 = vadd.s32 2654435769, %v642_v37  ;;  %v646_v12 = vshrl.u32 %v642_v37, 8  ;;  %v605_v56 = vmul.f32 5.9604645e-08, %v601_v31 }
  0x9f   : > { %v683_v57 = vadd.s32 2654435769, %v643_v39  ;;  %v684_v58 = vadd.s32 2654435769, %v2562_v40  ;;  %v647_v16 = vshrl.u32 %v643_v39, 8  ;;  %v648_v19 = vshrl.u32 %v2562_v40, 8 }
  0xa0   : > { %v685_v49 = vadd.s32 2654435769, %v2564_v43  ;;  %v686_v0 = vshrl.u32 %v682_v51, 16  ;;  %v649_v20 = vshrl.u32 %v2564_v43, 8  ;;  %v650_v28 = vshrl.u32 %v646_v12, 16 }
  0xa1   : > { %v687_v2 = vshrl.u32 %v683_v57, 16  ;;  %v688_v3 = vshrl.u32 %v684_v58, 16  ;;  %v656_v32 = vshrl.u32 %v647_v16, 16  ;;  %v662_v35 = vshrl.u32 %v648_v19, 16 }
  0xa2   : > { %v689_v5 = vshrl.u32 %v685_v49, 16  ;;  %v690_v6 = vxor.u32 %v686_v0, %v682_v51  ;;  %v668_v36 = vshrl.u32 %v649_v20, 16  ;;  %v651_v39 = vand.u32 65535, %v646_v12 }
  0xa3   : > { %v691_v9 = vxor.u32 %v687_v2, %v683_v57  ;;  %v692_v10 = vxor.u32 %v688_v3, %v684_v58  ;;  %v657_v40 = vand.u32 65535, %v647_v16  ;;  %v652_v46 = vcvt.s32.f32 %v650_v28 }
  0xa4   : > { %v693_v13 = vxor.u32 %v689_v5, %v685_v49  ;;  %v694_v14 = vmul.u32 2146121005, %v690_v6  ;;  %v663_v47 = vand.u32 65535, %v648_v19  ;;  %v658_v54 = vcvt.s32.f32 %v656_v32 }
  0xa5   : > { %v695_v17 = vmul.u32 2146121005, %v691_v9  ;;  %v696_v18 = vmul.u32 2146121005, %v692_v10  ;;  %v669_v55 = vand.u32 65535, %v649_v20  ;;  %v664_v59 = vcvt.s32.f32 %v662_v35 }
  0xa6   : > { %v697_v21 = vmul.u32 2146121005, %v693_v13  ;;  %v698_v22 = vshrl.u32 %v694_v14, 15  ;;  %v670_v60 = vcvt.s32.f32 %v668_v36  ;;  %v604_v53 = vmul.f32 5.9604645e-08, %v595_v27 }
  0xa7   : > { %v699_v25 = vshrl.u32 %v695_v17, 15  ;;  %v700_v26 = vshrl.u32 %v696_v18, 15  ;;  %v653_v1 = vmul.f32 65536.0, %v652_v46  ;;  %v654_v2 = vcvt.s32.f32 %v651_v39 }
  0xa8   : > { %v701_v29 = vshrl.u32 %v697_v21, 15  ;;  %v702_v30 = vxor.u32 %v698_v22, %v694_v14  ;;  %v659_v4 = vmul.f32 65536.0, %v658_v54  ;;  %v660_v5 = vcvt.s32.f32 %v657_v40 }
  0xa9   : > { %v703_v33 = vxor.u32 %v699_v25, %v695_v17  ;;  %v704_v34 = vxor.u32 %v700_v26, %v696_v18  ;;  %v666_v6 = vcvt.s32.f32 %v663_v47  ;;  %v665_v7 = vmul.f32 65536.0, %v664_v59 }
  0xaa   : > { %v705_v37 = vxor.u32 %v701_v29, %v697_v21  ;;  %v706_v38 = vmul.u32 2221713035, %v702_v30  ;;  %v671_v8 = vmul.f32 65536.0, %v670_v60  ;;  %v672_v9 = vcvt.s32.f32 %v669_v55 }
  0xab   : > { %v707_v42 = vmul.u32 2221713035, %v703_v33  ;;  %v708_v43 = vmul.u32 2221713035, %v704_v34  ;;  %v655_v16 = vadd.f32 %v654_v2, %v653_v1  ;;  %v2574_v19 = vadd.f32 %v603_v63, %v2556_v44 }
  0xac   : > { %v709_v50 = vmul.u32 2221713035, %v705_v37  ;;  %v710_v51 = vshrl.u32 %v706_v38, 16  ;;  %v2577_v20 = vadd.f32 %v604_v53, %v2558_v45  ;;  %v2580_v21 = vadd.f32 %v605_v56, %v2560_v48 }
  0xad   : > { %v711_v57 = vshrl.u32 %v707_v42, 16  ;;  %v712_v58 = vshrl.u32 %v708_v43, 16  ;;  %v661_v22 = vadd.f32 %v660_v5, %v659_v4  ;;  %v667_v23 = vadd.f32 %v666_v6, %v665_v7 }
  0xae   : > { %v713_v49 = vshrl.u32 %v709_v50, 16  ;;  %v714_v61 = vxor.u32 %v710_v51, %v706_v38  ;;  %v673_v24 = vadd.f32 %v672_v9, %v671_v8  ;;  %v674_v30 = vmul.f32 5.9604645e-08, %v655_v16 }
  0xaf   : > { %v715_v52 = vxor.u32 %v711_v57, %v707_v42  ;;  %v716_v0 = vxor.u32 %v712_v58, %v708_v43  ;;  %v675_v33 = vmul.f32 5.9604645e-08, %v661_v22  ;;  %v676_v56 = vmul.f32 5.9604645e-08, %v667_v23 }
  0xb0   : > { %v717_v3 = vxor.u32 %v713_v49, %v709_v50  ;;  %v754_v10 = vadd.s32 2654435769, %v714_v61  ;;  %v718_v11 = vshrl.u32 %v714_v61, 8  ;;  %v677_v4 = vmul.f32 5.9604645e-08, %v673_v24 }
  0xb1   : > { %v719_v12 = vshrl.u32 %v715_v52, 8  ;;  %v755_v13 = vadd.s32 2654435769, %v715_v52  ;;  %v756_v14 = vadd.s32 2654435769, %v716_v0  ;;  %v720_v17 = vshrl.u32 %v716_v0, 8 }
  0xb2   : > { %v757_v18 = vadd.s32 2654435769, %v717_v3  ;;  %v721_v25 = vshrl.u32 %v717_v3, 8  ;;  %v758_v26 = vshrl.u32 %v754_v10, 16  ;;  %v722_v27 = vshrl.u32 %v718_v11, 16 }
  0xb3   : > { %v728_v41 = vshrl.u32 %v719_v12, 16  ;;  %v759_v28 = vshrl.u32 %v755_v13, 16  ;;  %v760_v29 = vshrl.u32 %v756_v14, 16  ;;  %v734_v31 = vshrl.u32 %v720_v17, 16 }
  0xb4   : > { %v761_v32 = vshrl.u32 %v757_v18, 16  ;;  %v762_v44 = vxor.u32 %v758_v26, %v754_v10  ;;  %v723_v34 = vand.u32 65535, %v718_v11  ;;  %v729_v36 = vand.u32 65535, %v719_v12 }
  0xb5   : > { %v763_v45 = vxor.u32 %v759_v28, %v755_v13  ;;  %v764_v35 = vxor.u32 %v760_v29, %v756_v14  ;;  %v740_v48 = vshrl.u32 %v721_v25, 16  ;;  %v724_v39 = vcvt.s32.f32 %v722_v27 }
  0xb6   : > { %v765_v37 = vxor.u32 %v761_v32, %v757_v18  ;;  %v766_v38 = vmul.u32 2146121005, %v762_v44  ;;  %v730_v40 = vcvt.s32.f32 %v728_v41  ;;  %v735_v46 = vand.u32 65535, %v720_v17 }
  0xb7   : > { %v767_v42 = vmul.u32 2146121005, %v763_v45  ;;  %v768_v43 = vmul.u32 2146121005, %v764_v35  ;;  %v736_v47 = vcvt.s32.f32 %v734_v31  ;;  %v726_v54 = vcvt.s32.f32 %v723_v34 }
  0xb8   : > { %v769_v50 = vmul.u32 2146121005, %v765_v37  ;;  %v770_v51 = vshrl.u32 %v766_v38, 15  ;;  %v741_v55 = vand.u32 65535, %v721_v25  ;;  %v732_v59 = vcvt.s32.f32 %v729_v36 }
  0xb9   : > { %v771_v57 = vshrl.u32 %v767_v42, 15  ;;  %v772_v58 = vshrl.u32 %v768_v43, 15  ;;  %v742_v60 = vcvt.s32.f32 %v740_v48  ;;  %v725_v62 = vmul.f32 65536.0, %v724_v39 }
  0xba   : > { %v773_v49 = vshrl.u32 %v769_v50, 15  ;;  %v774_v61 = vxor.u32 %v770_v51, %v766_v38  ;;  %v731_v63 = vmul.f32 65536.0, %v730_v40  ;;  %v737_v53 = vmul.f32 65536.0, %v736_v47 }
  0xbb   : > { %v775_v52 = vxor.u32 %v771_v57, %v767_v42  ;;  %v776_v0 = vxor.u32 %v772_v58, %v768_v43  ;;  %v738_v1 = vcvt.s32.f32 %v735_v46  ;;  %v743_v7 = vmul.f32 65536.0, %v742_v60 }
  0xbc   : > { %v777_v2 = vxor.u32 %v773_v49, %v769_v50  ;;  %v778_v3 = vmul.u32 2221713035, %v774_v61  ;;  %v744_v8 = vcvt.s32.f32 %v741_v55  ;;  %v727_v11 = vadd.f32 %v726_v54, %v725_v62 }
  0xbd   : > { %v779_v5 = vmul.u32 2221713035, %v775_v52  ;;  %v780_v6 = vmul.u32 2221713035, %v776_v0  ;;  %v733_v12 = vadd.f32 %v732_v59, %v731_v63  ;;  %v678_v16 = vadd.f32 %v674_v30, %v2571_v15 }
  0xbe   : > { %v781_v9 = vmul.u32 2221713035, %v777_v2  ;;  %v782_v10 = vshrl.u32 %v778_v3, 16  ;;  %v739_v17 = vadd.f32 %v738_v1, %v737_v53  ;;  %v679_v25 = vadd.f32 %v675_v33, %v2574_v19 }
  0xbf   : > { %v783_v13 = vshrl.u32 %v779_v5, 16  ;;  %v784_v14 = vshrl.u32 %v780_v6, 16  ;;  %v680_v23 = vadd.f32 %v676_v56, %v2577_v20  ;;  %v681_v27 = vadd.f32 %v677_v4, %v2580_v21 }
  0xc0   : > { %v785_v18 = vshrl.u32 %v781_v9, 16  ;;  %v786_v22 = vxor.u32 %v782_v10, %v778_v3  ;;  %v745_v41 = vadd.f32 %v744_v8, %v743_v7  ;;  %v746_v31 = vmul.f32 5.9604645e-08, %v727_v11 }
  0xc1   : > { %v787_v24 = vxor.u32 %v783_v13, %v779_v5  ;;  %v788_v26 = vxor.u32 %v784_v14, %v780_v6  ;;  %v747_v32 = vmul.f32 5.9604645e-08, %v733_v12  ;;  %v748_v45 = vmul.f32 5.9604645e-08, %v739_v17 }
  0xc2   : > { %v789_v28 = vxor.u32 %v785_v18, %v781_v9  ;;  %v790_v29 = vshrl.u32 %v786_v22, 8  ;;  %v749_v46 = vmul.f32 5.9604645e-08, %v745_v41  ;;  %v750_v57 = vadd.f32 %v746_v31, %v678_v16  ;;  %v834_v16 = vld [vmem:[%s2540_s23] sm:$0xff]  ;;  %v835_v18 = vld [vmem:[%s2540_s23 + $0x8] sm:$0xff]  ;;  %v836_v22 = vld [vmem:[%s2540_s23 + $0x10] sm:$0xff] }
  0xc3   : > { %v791_v44 = vshrl.u32 %v787_v24, 8  ;;  %v792_v34 = vshrl.u32 %v788_v26, 8  ;;  %v751_v60 = vadd.f32 %v747_v32, %v679_v25  ;;  %v752_v49 = vadd.f32 %v748_v45, %v680_v23  ;;  %v837_v23 = vld [vmem:[%s2540_s23 + $0x18] sm:$0xff] }
  0xc4   : > { %v793_v15 = vshrl.u32 %v789_v28, 8  ;;  %v794_v30 = vshrl.u32 %v790_v29, 16  ;;  %v795_v35 = vand.u32 65535, %v790_v29  ;;  %v753_v63 = vadd.f32 %v749_v46, %v681_v27 }
  0xc5   : > { %v800_v36 = vshrl.u32 %v791_v44, 16  ;;  %v801_v19 = vand.u32 65535, %v791_v44  ;;  %v806_v33 = vshrl.u32 %v792_v34, 16  ;;  %v807_v20 = vand.u32 65535, %v792_v34 }
  0xc6   : > { %v796_v48 = vcvt.s32.f32 %v794_v30  ;;  %v798_v37 = vcvt.s32.f32 %v795_v35  ;;  %v812_v38 = vshrl.u32 %v793_v15, 16  ;;  %v813_v21 = vand.u32 65535, %v793_v15 }
  0xc7   : > { %v802_v39 = vcvt.s32.f32 %v800_v36  ;;  %v804_v40 = vcvt.s32.f32 %v801_v19  ;;  %v808_v42 = vcvt.s32.f32 %v806_v33  ;;  %v810_v43 = vcvt.s32.f32 %v807_v20 }
  0xc8   : > { %v797_v47 = vmul.f32 65536.0, %v796_v48  ;;  %v814_v50 = vcvt.s32.f32 %v812_v38  ;;  %v816_v51 = vcvt.s32.f32 %v813_v21  ;;  %v376_v53 = vstv %s375_s24 }
  0xc9   : > { %v803_v54 = vmul.f32 65536.0, %v802_v39  ;;  %v809_v55 = vmul.f32 65536.0, %v808_v42  ;;  %v838_v8 = vmul.f32 0.2, %v376_v53 }
  0xca   : > { %v799_v58 = vadd.f32 %v798_v37, %v797_v47  ;;  %v815_v59 = vmul.f32 65536.0, %v814_v50 }
  0xcb   : > { %v805_v61 = vadd.f32 %v804_v40, %v803_v54  ;;  %v811_v62 = vadd.f32 %v810_v43, %v809_v55 }
  0xcc   : > { %v817_v52 = vadd.f32 %v816_v51, %v815_v59  ;;  %v818_v0 = vmul.f32 5.9604645e-08, %v799_v58 }
  0xcd   : > { %v819_v1 = vmul.f32 5.9604645e-08, %v805_v61  ;;  %v820_v2 = vmul.f32 5.9604645e-08, %v811_v62 }
  0xce   : > { %v821_v3 = vmul.f32 5.9604645e-08, %v817_v52  ;;  %v822_v56 = vadd.f32 %v818_v0, %v750_v57 }
  0xcf   : > { %v823_v4 = vadd.f32 %v819_v1, %v751_v60  ;;  %v824_v5 = vadd.f32 %v820_v2, %v752_v49 }
  0xd0   : > { %v825_v6 = vadd.f32 %v821_v3, %v753_v63  ;;  %v1731_v7 = vadd.f32 -3.0, %v822_v56 }
  0xd1   : > { %v1732_v9 = vadd.f32 -3.0, %v823_v4  ;;  %v1733_v10 = vadd.f32 -3.0, %v824_v5 }
  0xd2   : > { %v1734_v11 = vadd.f32 -3.0, %v825_v6  ;;  %v830_v12 = vmul.f32 1.4142135, %v1731_v7 }
  0xd3   : > { %v831_v13 = vmul.f32 1.4142135, %v1732_v9  ;;  %v832_v14 = vmul.f32 1.4142135, %v1733_v10 }
  0xd4   : > { %v833_v17 = vmul.f32 1.4142135, %v1734_v11  ;;  %v840_v25 = vmul.f32 %v838_v8, %v830_v12 }
  0xd5   : > { %v841_v24 = vmul.f32 %v838_v8, %v831_v13  ;;  %v842_v26 = vmul.f32 %v838_v8, %v832_v14 }
  0xd6   : > { %v843_v27 = vmul.f32 %v838_v8, %v833_v17  ;;  %v844_v41 = vadd.f32 %v840_v25, %v834_v16 }
  0xd7   : > { %v845_v28 = vadd.f32 %v841_v24, %v835_v18  ;;  %v846_v29 = vadd.f32 %v842_v26, %v836_v22 }
  0xd8   : > { %v847_v31 = vadd.f32 %v843_v27, %v837_v23  ;;  %848 = vst [vmem:[%s2540_s23] sm:$0xff] %v844_v41 }
  0xd9   : > { %849 = vst [vmem:[%s2540_s23 + $0x8] sm:$0xff] %v845_v28 }
  0xda   : > { %850 = vst [vmem:[%s2540_s23 + $0x10] sm:$0xff] %v846_v29 }
  0xdb   : > { %851 = vst [vmem:[%s2540_s23 + $0x18] sm:$0xff] %v847_v31 }
  0xdc PF: > { %p1735_p4 = scmp.le.s32.totalorder %s2547_s30, 0 }
  0xdd   : > { %s862_s8 = scvt.s32.f32 (!%p1735_p4), %s2547_s30 }
  0xde   : > { %855 = sbr.rel (%p1735_p4) target bundleno = 679 (0x2a7), region = 72 }
  0xe3   : > { %v2597_v32 = vld [vmem:[%s2540_s23] sm:$0xff]  ;;  %v2600_v44 = vld [vmem:[%s2540_s23 + $0x10] sm:$0xff]  ;;  %v2603_v34 = vld [vmem:[%s2540_s23 + $0x8] sm:$0xff]  ;;  %vm879_vm0 = vcmask 130048  }
  0xe4   : > { %v2607_v45 = vpack.c.bf16 %v2600_v44, %v2597_v32  ;;  %v2610_v15 = vld [vmem:[%s2540_s23 + $0x18] sm:$0xff]  ;;  %v2011_v30 = vld [vmem:[%s2736_s3] sm:$0xff]  ;;  %v1800_v35 = vld [vmem:[#allocation8 + $0x70] sm:$0xf] }
  0xe5   : > { %v2617_v36 = vpack.c.bf16 %v2610_v15, %v2603_v34  ;;  %v2027_v19 = vld [vmem:[#allocation8 + $0x74] sm:$0xf0]  ;;  %v1864_v33 = vld [vmem:[#allocation8 + $0xf0] sm:$0xf]  ;;  %v2026_v38 = vld [vmem:[#allocation8 + $0x74] sm:$0xf] }
  0xe6   : > { %v2043_v20 = vld [vmem:[#allocation8 + $0xf4] sm:$0xf0]  ;;  %890 = vmatpush.bf16.msra.mxu0 %v2607_v45  ;;  %v1801_v48 = vor.u32 %v2027_v19, %v1800_v35  ;;  %v1802_v21 = vld [vmem:[#allocation8 + $0x78] sm:$0xf0]  ;;  %v2042_v39 = vld [vmem:[#allocation8 + $0xf4] sm:$0xf] }
  0xe7   : > { %v1865_v37 = vor.u32 %v2043_v20, %v1864_v33  ;;  %904 = vmatpush.bf16.msra.mxu1 %v2617_v36  ;;  %v1805_v40 = vor.u32 %v2026_v38, %v1802_v21  ;;  %v1866_v42 = vld [vmem:[#allocation8 + $0xf8] sm:$0xf0]  ;;  %v1792_v43 = vld [vmem:[#allocation8 + $0x60] sm:$0xf]  ;;  %v2025_v46 = vld [vmem:[#allocation8 + $0x64] sm:$0xf0] }
  0xe8   : > { %1105 = vmatpush.bf16.msra.mxu2 %v1801_v48  ;;  %v1869_v47 = vor.u32 %v2042_v39, %v1866_v42  ;;  %v1793_v50 = vor.u32 %v2025_v46, %v1792_v43  ;;  %v1856_v51 = vld [vmem:[#allocation8 + $0xe0] sm:$0xf]  ;;  %v2041_v54 = vld [vmem:[#allocation8 + $0xe4] sm:$0xf0]  ;;  %v2024_v55 = vld [vmem:[#allocation8 + $0x64] sm:$0xf] }
  0xe9   : > { %1119 = vmatpush.bf16.msra.mxu3 %v1865_v37  ;;  %1740 = vmatmul.msk.bf16.vlgmr.msra.gmra.mxu0 %vm879_vm0, %v2011_v30  ;;  %v1857_v57 = vor.u32 %v2041_v54, %v1856_v51  ;;  %v1794_v58 = vld [vmem:[#allocation8 + $0x68] sm:$0xf0]  ;;  %v2040_v59 = vld [vmem:[#allocation8 + $0xe4] sm:$0xf]  ;;  %v1784_v61 = vld [vmem:[#allocation8 + $0x50] sm:$0xf] }
  0xea   : > { %v1858_v60 = vld [vmem:[#allocation8 + $0xe8] sm:$0xf0]  ;;  %1741 = vmatmul.msk.bf16.vlgmr.msra.gmra.mxu1 %vm879_vm0, %v2011_v30  ;;  %1133 = vmatpush.bf16.msrb.mxu0 %v1805_v40  ;;  %v1797_v49 = vor.u32 %v2024_v55, %v1794_v58  ;;  %v2023_v62 = vld [vmem:[#allocation8 + $0x54] sm:$0xf0]  ;;  %v1848_v63 = vld [vmem:[#allocation8 + $0xd0] sm:$0xf] }
  0xeb   : > { %1147 = vmatpush.bf16.msrb.mxu1 %v1869_v47  ;;  %v1861_v52 = vor.u32 %v2040_v59, %v1858_v60  ;;  %v2039_v0 = vld [vmem:[#allocation8 + $0xd4] sm:$0xf0]  ;;  %v2022_v53 = vld [vmem:[#allocation8 + $0x54] sm:$0xf]  ;;  %v1786_v1 = vld [vmem:[#allocation8 + $0x58] sm:$0xf0]  ;;  %v1785_v2 = vor.u32 %v2023_v62, %v1784_v61 }
  0xec   : > { %1106 = vmatpush.bf16.msra.mxu2 %v1793_v50  ;;  %v1849_v3 = vor.u32 %v2039_v0, %v1848_v63  ;;  %v2038_v56 = vld [vmem:[#allocation8 + $0xd4] sm:$0xf]  ;;  %v1850_v4 = vld [vmem:[#allocation8 + $0xd8] sm:$0xf0]  ;;  %v1776_v5 = vld [vmem:[#allocation8 + $0x40] sm:$0xf]  ;;  %v1789_v9 = vor.u32 %v2022_v53, %v1786_v1 }
  0xed   : > { %1120 = vmatpush.bf16.msra.mxu3 %v1857_v57  ;;  %v2021_v6 = vld [vmem:[#allocation8 + $0x44] sm:$0xf0]  ;;  %v1840_v7 = vld [vmem:[#allocation8 + $0xc0] sm:$0xf]  ;;  %v1853_v10 = vor.u32 %v2038_v56, %v1850_v4  ;;  %v2020_v11 = vld [vmem:[#allocation8 + $0x44] sm:$0xf] }
  0xee   : > { %v2037_v8 = vld [vmem:[#allocation8 + $0xc4] sm:$0xf0]  ;;  %1134 = vmatpush.bf16.msrb.mxu0 %v1797_v49  ;;  %v1778_v12 = vld [vmem:[#allocation8 + $0x48] sm:$0xf0]  ;;  %v1777_v13 = vor.u32 %v2021_v6, %v1776_v5  ;;  %v2036_v16 = vld [vmem:[#allocation8 + $0xc4] sm:$0xf] }
  0xef   : > { %1148 = vmatpush.bf16.msrb.mxu1 %v1861_v52  ;;  %v1841_v14 = vor.u32 %v2037_v8, %v1840_v7  ;;  %v1842_v17 = vld [vmem:[#allocation8 + $0xc8] sm:$0xf0]  ;;  %v1768_v18 = vld [vmem:[#allocation8 + $0x30] sm:$0xf]  ;;  %v2019_v22 = vld [vmem:[#allocation8 + $0x34] sm:$0xf0]  ;;  %v1781_v24 = vor.u32 %v2020_v11, %v1778_v12 }
  0xf0   : > { %1107 = vmatpush.bf16.msra.mxu2 %v1785_v2  ;;  %v1832_v25 = vld [vmem:[#allocation8 + $0xb0] sm:$0xf]  ;;  %v2035_v23 = vld [vmem:[#allocation8 + $0xb4] sm:$0xf0]  ;;  %v1845_v26 = vor.u32 %v2036_v16, %v1842_v17  ;;  %v2018_v27 = vld [vmem:[#allocation8 + $0x34] sm:$0xf]  ;;  %v1769_v28 = vor.u32 %v2019_v22, %v1768_v18 }
  0xf1   : > { %1121 = vmatpush.bf16.msra.mxu3 %v1849_v3  ;;  %v1770_v41 = vld [vmem:[#allocation8 + $0x38] sm:$0xf0]  ;;  %v1833_v29 = vor.u32 %v2035_v23, %v1832_v25  ;;  %v2034_v31 = vld [vmem:[#allocation8 + $0xb4] sm:$0xf]  ;;  %v1760_v33 = vld [vmem:[#allocation8 + $0x20] sm:$0xf] }
  0xf2   : > { %1135 = vmatpush.bf16.msrb.mxu0 %v1789_v9  ;;  %v1834_v30 = vld [vmem:[#allocation8 + $0xb8] sm:$0xf0]  ;;  %v1773_v35 = vor.u32 %v2018_v27, %v1770_v41  ;;  %v2017_v20 = vld [vmem:[#allocation8 + $0x24] sm:$0xf0]  ;;  %v1824_v48 = vld [vmem:[#allocation8 + $0xa0] sm:$0xf] }
  0xf3   : > { %1149 = vmatpush.bf16.msrb.mxu1 %v1853_v10  ;;  %v1837_v19 = vor.u32 %v2034_v31, %v1834_v30  ;;  %v1761_v37 = vor.u32 %v2017_v20, %v1760_v33  ;;  %v2033_v38 = vld [vmem:[#allocation8 + $0xa4] sm:$0xf0]  ;;  %v2016_v21 = vld [vmem:[#allocation8 + $0x24] sm:$0xf]  ;;  %v1762_v39 = vld [vmem:[#allocation8 + $0x28] sm:$0xf0] }
  0xf4   : > { %1108 = vmatpush.bf16.msra.mxu2 %v1777_v13  ;;  %v1825_v40 = vor.u32 %v2033_v38, %v1824_v48  ;;  %v1765_v42 = vor.u32 %v2016_v21, %v1762_v39  ;;  %v2032_v43 = vld [vmem:[#allocation8 + $0xa4] sm:$0xf]  ;;  %v1826_v46 = vld [vmem:[#allocation8 + $0xa8] sm:$0xf0]  ;;  %v1752_v50 = vld [vmem:[#allocation8 + $0x10] sm:$0xf] }
  0xf5   : > { %1122 = vmatpush.bf16.msra.mxu3 %v1841_v14  ;;  %v1829_v47 = vor.u32 %v2032_v43, %v1826_v46  ;;  %v2015_v51 = vld [vmem:[#allocation8 + $0x14] sm:$0xf0]  ;;  %v1816_v54 = vld [vmem:[#allocation8 + $0x90] sm:$0xf]  ;;  %v2014_v58 = vld [vmem:[#allocation8 + $0x14] sm:$0xf] }
  0xf6   : > { %1136 = vmatpush.bf16.msrb.mxu0 %v1781_v24  ;;  %v1753_v55 = vor.u32 %v2015_v51, %v1752_v50  ;;  %v2031_v57 = vld [vmem:[#allocation8 + $0x94] sm:$0xf0]  ;;  %v1754_v59 = vld [vmem:[#allocation8 + $0x18] sm:$0xf0]  ;;  %v2030_v61 = vld [vmem:[#allocation8 + $0x94] sm:$0xf] }
  0xf7   : > { %1150 = vmatpush.bf16.msrb.mxu1 %v1845_v26  ;;  %v1817_v60 = vor.u32 %v2031_v57, %v1816_v54  ;;  %v1757_v49 = vor.u32 %v2014_v58, %v1754_v59  ;;  %v1818_v62 = vld [vmem:[#allocation8 + $0x98] sm:$0xf0]  ;;  %v1744_v52 = vld [vmem:[#allocation8] sm:$0xf]  ;;  %v2013_v0 = vld [vmem:[#allocation8 + $0x4] sm:$0xf0] }
  0xf8   : > { %1109 = vmatpush.bf16.msra.mxu2 %v1769_v28  ;;  %v1821_v63 = vor.u32 %v2030_v61, %v1818_v62  ;;  %v1808_v53 = vld [vmem:[#allocation8 + $0x80] sm:$0xf]  ;;  %v1745_v1 = vor.u32 %v2013_v0, %v1744_v52  ;;  %v2029_v2 = vld [vmem:[#allocation8 + $0x84] sm:$0xf0]  ;;  %v2012_v3 = vld [vmem:[#allocation8 + $0x4] sm:$0xf] }
  0xf9   : > { %1123 = vmatpush.bf16.msra.mxu3 %v1833_v29  ;;  %v1746_v56 = vld [vmem:[#allocation8 + $0x8] sm:$0xf0]  ;;  %v1809_v4 = vor.u32 %v2029_v2, %v1808_v53  ;;  %v2028_v6 = vld [vmem:[#allocation8 + $0x84] sm:$0xf]  ;;  %v1998_v17 = vld [vmem:[#allocation10 + $0xf0] sm:$0xf] }
  0xfa   : > { %1137 = vmatpush.bf16.msrb.mxu0 %v1773_v35  ;;  %v1749_v5 = vor.u32 %v2012_v3, %v1746_v56  ;;  %v1810_v7 = vld [vmem:[#allocation8 + $0x88] sm:$0xf0]  ;;  %v2044_v16 = vld [vmem:[%s2738_s5] sm:$0xff]  ;;  %v2076_v22 = vld [vmem:[#allocation10 + $0xf4] sm:$0xf0] }
  0xfb   : > { %1151 = vmatpush.bf16.msrb.mxu1 %v1837_v19  ;;  %v1813_v8 = vor.u32 %v2028_v6, %v1810_v7  ;;  %v2059_v25 = vld [vmem:[#allocation10 + $0x74] sm:$0xf]  ;;  %v1936_v23 = vld [vmem:[#allocation10 + $0x78] sm:$0xf0]  ;;  %v1999_v24 = vor.u32 %v2076_v22, %v1998_v17  ;;  %v1926_v29 = vld [vmem:[#allocation10 + $0x60] sm:$0xf] }
  0xfc   : > { %1110 = vmatpush.bf16.msra.mxu2 %v1761_v37  ;;  %v1939_v26 = vor.u32 %v2059_v25, %v1936_v23  ;;  %v2075_v27 = vld [vmem:[#allocation10 + $0xf4] sm:$0xf]  ;;  %v2000_v41 = vld [vmem:[#allocation10 + $0xf8] sm:$0xf0]  ;;  %v2058_v31 = vld [vmem:[#allocation10 + $0x64] sm:$0xf0] }
  0xfd   : > { %1124 = vmatpush.bf16.msra.mxu3 %v1825_v40  ;;  %v2003_v28 = vor.u32 %v2075_v27, %v2000_v41  ;;  %v1990_v30 = vld [vmem:[#allocation10 + $0xe0] sm:$0xf]  ;;  %v1927_v35 = vor.u32 %v2058_v31, %v1926_v29  ;;  %v2074_v19 = vld [vmem:[#allocation10 + $0xe4] sm:$0xf0]  ;;  %v2057_v33 = vld [vmem:[#allocation10 + $0x64] sm:$0xf] }
  0xfe   : > { %1138 = vmatpush.bf16.msrb.mxu0 %v1765_v42  ;;  %v1928_v20 = vld [vmem:[#allocation10 + $0x68] sm:$0xf0]  ;;  %v1991_v48 = vor.u32 %v2074_v19, %v1990_v30  ;;  %v2073_v38 = vld [vmem:[#allocation10 + $0xe4] sm:$0xf]  ;;  %v1918_v40 = vld [vmem:[#allocation10 + $0x50] sm:$0xf] }
  0xff   : > { %1152 = vmatpush.bf16.msrb.mxu1 %v1829_v47  ;;  %v1931_v37 = vor.u32 %v2057_v33, %v1928_v20  ;;  %v1992_v21 = vld [vmem:[#allocation10 + $0xe8] sm:$0xf0]  ;;  %v2056_v42 = vld [vmem:[#allocation10 + $0x54] sm:$0xf0]  ;;  %v1982_v43 = vld [vmem:[#allocation10 + $0xd0] sm:$0xf] }
 0x100   : > { %1111 = vmatpush.bf16.msra.mxu2 %v1753_v55  ;;  %v1995_v39 = vor.u32 %v2073_v38, %v1992_v21  ;;  %v1919_v46 = vor.u32 %v2056_v42, %v1918_v40  ;;  %v2072_v47 = vld [vmem:[#allocation10 + $0xd4] sm:$0xf0]  ;;  %v2055_v50 = vld [vmem:[#allocation10 + $0x54] sm:$0xf]  ;;  %v1920_v51 = vld [vmem:[#allocation10 + $0x58] sm:$0xf0] }
 0x101   : > { %1125 = vmatpush.bf16.msra.mxu3 %v1817_v60  ;;  %v1983_v54 = vor.u32 %v2072_v47, %v1982_v43  ;;  %v1923_v55 = vor.u32 %v2055_v50, %v1920_v51  ;;  %v2071_v57 = vld [vmem:[#allocation10 + $0xd4] sm:$0xf]  ;;  %v1984_v58 = vld [vmem:[#allocation10 + $0xd8] sm:$0xf0]  ;;  %v1910_v60 = vld [vmem:[#allocation10 + $0x40] sm:$0xf] }
 0x102   : > { %1139 = vmatpush.bf16.msrb.mxu0 %v1757_v49  ;;  %v1987_v59 = vor.u32 %v2071_v57, %v1984_v58  ;;  %v2054_v49 = vld [vmem:[#allocation10 + $0x44] sm:$0xf0]  ;;  %v1974_v61 = vld [vmem:[#allocation10 + $0xc0] sm:$0xf]  ;;  %v2053_v52 = vld [vmem:[#allocation10 + $0x44] sm:$0xf] }
 0x103   : > { %1153 = vmatpush.bf16.msrb.mxu1 %v1821_v63  ;;  %v1911_v62 = vor.u32 %v2054_v49, %v1910_v60  ;;  %v2070_v63 = vld [vmem:[#allocation10 + $0xc4] sm:$0xf0]  ;;  %v1912_v0 = vld [vmem:[#allocation10 + $0x48] sm:$0xf0]  ;;  %v2069_v2 = vld [vmem:[#allocation10 + $0xc4] sm:$0xf] }
 0x104   : > { %1112 = vmatpush.bf16.msra.mxu2 %v1745_v1  ;;  %v1975_v53 = vor.u32 %v2070_v63, %v1974_v61  ;;  %v1915_v1 = vor.u32 %v2053_v52, %v1912_v0  ;;  %v1976_v3 = vld [vmem:[#allocation10 + $0xc8] sm:$0xf0]  ;;  %v1966_v6 = vld [vmem:[#allocation10 + $0xb0] sm:$0xf]  ;;  %v1958_v17 = vld [vmem:[#allocation10 + $0xa0] sm:$0xf] }
 0x105   : > { %1126 = vmatpush.bf16.msra.mxu3 %v1809_v4  ;;  %v1979_v56 = vor.u32 %v2069_v2, %v1976_v3  ;;  %v1902_v4 = vld [vmem:[#allocation10 + $0x30] sm:$0xf]  ;;  %v2066_v22 = vld [vmem:[#allocation10 + $0xa4] sm:$0xf0]  ;;  %v2049_v25 = vld [vmem:[#allocation10 + $0x24] sm:$0xf] }
 0x106   : > { %1140 = vmatpush.bf16.msrb.mxu0 %v1749_v5  ;;  %v2052_v5 = vld [vmem:[#allocation10 + $0x34] sm:$0xf0]  ;;  %v1896_v23 = vld [vmem:[#allocation10 + $0x28] sm:$0xf0]  ;;  %v2065_v27 = vld [vmem:[#allocation10 + $0xa4] sm:$0xf] }
 0x107   : > { %1154 = vmatpush.bf16.msrb.mxu1 %v1813_v8  ;;  %v1903_v7 = vor.u32 %v2052_v5, %v1902_v4  ;;  %v2068_v8 = vld [vmem:[#allocation10 + $0xb4] sm:$0xf0]  ;;  %v1960_v41 = vld [vmem:[#allocation10 + $0xa8] sm:$0xf0]  ;;  %v1886_v29 = vld [vmem:[#allocation10 + $0x10] sm:$0xf] }
 0x108   : > { %1178 = vmatpush.bf16.msrb.mxu2 %v2607_v45  ;;  %v1934_v45 = vld [vmem:[#allocation10 + $0x70] sm:$0xf]  ;;  %v2048_v31 = vld [vmem:[#allocation10 + $0x14] sm:$0xf0]  ;;  %v2047_v33 = vld [vmem:[#allocation10 + $0x14] sm:$0xf] }
 0x109   : > { %1192 = vmatpush.bf16.msrb.mxu3 %v2617_v36  ;;  %v2060_v36 = vld [vmem:[#allocation10 + $0x74] sm:$0xf0]  ;;  %v1950_v30 = vld [vmem:[#allocation10 + $0x90] sm:$0xf]  ;;  %v1888_v20 = vld [vmem:[#allocation10 + $0x18] sm:$0xf0] }
 0x10a   : > { %v1935_v18 = vor.u32 %v2060_v36, %v1934_v45  ;;  %v1894_v45 = vld [vmem:[#allocation10 + $0x20] sm:$0xf]  ;;  %v2050_v36 = vld [vmem:[#allocation10 + $0x24] sm:$0xf0]  ;;  %v2064_v19 = vld [vmem:[#allocation10 + $0x94] sm:$0xf0] }
 0x10b   : > { %1407 = vmatpush.bf16.msra.mxu1 %v1999_v24  ;;  %v1959_v24 = vor.u32 %v2066_v22, %v1958_v17  ;;  %v2063_v38 = vld [vmem:[#allocation10 + $0x94] sm:$0xf]  ;;  %v1952_v21 = vld [vmem:[#allocation10 + $0x98] sm:$0xf0]  ;;  %v1878_v40 = vld [vmem:[#allocation10] sm:$0xf] }
 0x10c   : > { %1393 = vmatpush.bf16.msra.mxu0 %v1935_v18  ;;  %v1895_v18 = vor.u32 %v2050_v36, %v1894_v45  ;;  %v2046_v42 = vld [vmem:[#allocation10 + $0x4] sm:$0xf0]  ;;  %v1942_v43 = vld [vmem:[#allocation10 + $0x80] sm:$0xf]  ;;  %v2045_v50 = vld [vmem:[#allocation10 + $0x4] sm:$0xf] }
 0x10d   : > { %v2062_v47 = vld [vmem:[#allocation10 + $0x84] sm:$0xf0]  ;;  %v1880_v51 = vld [vmem:[#allocation10 + $0x8] sm:$0xf0]  ;;  %v2061_v57 = vld [vmem:[#allocation10 + $0x84] sm:$0xf] }
 0x10e   : > { %v1944_v58 = vld [vmem:[#allocation10 + $0x88] sm:$0xf0] }
 0x10f   : > { %1408 = vmatpush.bf16.msra.mxu1 %v1991_v48  ;;  %v1951_v48 = vor.u32 %v2064_v19, %v1950_v30 }
 0x110   : > { %1394 = vmatpush.bf16.msra.mxu0 %v1927_v35  ;;  %v1887_v35 = vor.u32 %v2048_v31, %v1886_v29 }
 0x113   : > { %1409 = vmatpush.bf16.msra.mxu1 %v1983_v54  ;;  %v1943_v54 = vor.u32 %v2062_v47, %v1942_v43 }
 0x114   : > { %1395 = vmatpush.bf16.msra.mxu0 %v1919_v46  ;;  %v1879_v46 = vor.u32 %v2046_v42, %v1878_v40 }
 0x117   : > { %1410 = vmatpush.bf16.msra.mxu1 %v1975_v53 }
 0x118   : > { %1396 = vmatpush.bf16.msra.mxu0 %v1911_v62 }
 0x11c   : > { %1397 = vmatpush.bf16.msra.mxu0 %v1903_v7 }
 0x120   : > { %1398 = vmatpush.bf16.msra.mxu0 %v1895_v18 }
 0x124   : > { %1399 = vmatpush.bf16.msra.mxu0 %v1887_v35 }
 0x128   : > { %1400 = vmatpush.bf16.msra.mxu0 %v1879_v46 }
 0x166   : > { %v892_v9 = vpop.f32.mrf.mxu0 }
 0x167   : > { %v906_v10 = vpop.f32.mrf.mxu1 }
 0x16e   : > { %v894_v11 = vpop.f32.mrf.mxu0 }
 0x16f   : > { %v911_v12 = vpack.c.bf16 %v894_v11, %v892_v9  ;;  %v908_v13 = vpop.f32.mrf.mxu1  ;;  %v2051_v9 = vld [vmem:[#allocation10 + $0x34] sm:$0xf]  ;;  %v1967_v11 = vor.u32 %v2068_v8, %v1966_v6 }
 0x170   : > { %v912_v14 = vpack.c.bf16 %v908_v13, %v906_v10  ;;  %v1904_v10 = vld [vmem:[#allocation10 + $0x38] sm:$0xf0]  ;;  %v2067_v13 = vld [vmem:[#allocation10 + $0xb4] sm:$0xf] }
 0x171   : > { %1113 = vmatmul.bf16.vlgmr.msra.gmra.mxu2 %v911_v12  ;;  %1141 = vmatmul.bf16.vlgmr.msrb.gmra.mxu0 %v911_v12  ;;  %v1907_v12 = vor.u32 %v2051_v9, %v1904_v10 }
 0x172   : > { %1127 = vmatmul.bf16.vlgmr.msra.gmra.mxu3 %v912_v14  ;;  %1155 = vmatmul.bf16.vlgmr.msrb.gmra.mxu1 %v912_v14  ;;  %v1968_v14 = vld [vmem:[#allocation10 + $0xb8] sm:$0xf0] }
 0x173   : > { %1421 = vmatpush.bf16.msra.mxu2 %v1939_v26  ;;  %1435 = vmatpush.bf16.msra.mxu3 %v2003_v28  ;;  %v1899_v26 = vor.u32 %v2049_v25, %v1896_v23  ;;  %v1963_v28 = vor.u32 %v2065_v27, %v1960_v41 }
 0x174   : > { %1411 = vmatpush.bf16.msra.mxu1 %v1967_v11 }
 0x177   : > { %1422 = vmatpush.bf16.msra.mxu2 %v1931_v37  ;;  %1436 = vmatpush.bf16.msra.mxu3 %v1995_v39  ;;  %v1891_v37 = vor.u32 %v2047_v33, %v1888_v20  ;;  %v1955_v39 = vor.u32 %v2063_v38, %v1952_v21 }
 0x178   : > { %1412 = vmatpush.bf16.msra.mxu1 %v1959_v24 }
 0x17b   : > { %1423 = vmatpush.bf16.msra.mxu2 %v1923_v55  ;;  %1437 = vmatpush.bf16.msra.mxu3 %v1987_v59  ;;  %v1883_v55 = vor.u32 %v2045_v50, %v1880_v51  ;;  %v1947_v59 = vor.u32 %v2061_v57, %v1944_v58 }
 0x17c   : > { %1413 = vmatpush.bf16.msra.mxu1 %v1951_v48 }
 0x17f   : > { %1424 = vmatpush.bf16.msra.mxu2 %v1915_v1  ;;  %1438 = vmatpush.bf16.msra.mxu3 %v1979_v56 }
 0x180   : > { %1414 = vmatpush.bf16.msra.mxu1 %v1943_v54 }
 0x181   : > { %1874 = vmatmul.msk.bf16.vlgmr.msrb.gmra.mxu2 %vm879_vm0, %v2044_v16 }
 0x182   : > { %1875 = vmatmul.msk.bf16.vlgmr.msrb.gmra.mxu3 %vm879_vm0, %v2044_v16  ;;  %v1971_v16 = vor.u32 %v2067_v13, %v1968_v14 }
 0x183   : > { %1425 = vmatpush.bf16.msra.mxu2 %v1907_v12  ;;  %v863_v12 = vstv %s862_s8 }
 0x184   : > { %1439 = vmatpush.bf16.msra.mxu3 %v1971_v16 }
 0x187   : > { %1426 = vmatpush.bf16.msra.mxu2 %v1899_v26 }
 0x188   : > { %1440 = vmatpush.bf16.msra.mxu3 %v1963_v28 }
 0x18b   : > { %1427 = vmatpush.bf16.msra.mxu2 %v1891_v37 }
 0x18c   : > { %1441 = vmatpush.bf16.msra.mxu3 %v1955_v39 }
 0x18f   : > { %1428 = vmatpush.bf16.msra.mxu2 %v1883_v55 }
 0x190   : > { %1442 = vmatpush.bf16.msra.mxu3 %v1947_v59 }
 0x1ee   : > { %v1142_v4 = vpop.f32.mrf.mxu0 }
 0x1ef   : > { %v1156_v5 = vpop.f32.mrf.mxu1 }
 0x1f0   : > { %v1157_v45 = vadd.f32 %v1156_v5, %v1142_v4 }
 0x1f4   : > { %v1114_v60 = vpop.f32.mrf.mxu2 }
 0x1f5   : > { %v1128_v49 = vpop.f32.mrf.mxu3 }
 0x1f6   : > { %v1129_v61 = vadd.f32 %v1128_v49, %v1114_v60  ;;  %v1144_v6 = vpop.f32.mrf.mxu0 }
 0x1f7   : > { %v1158_v7 = vpop.f32.mrf.mxu1 }
 0x1f8   : > { %v1159_v30 = vadd.f32 %v1158_v7, %v1144_v6 }
 0x1fc   : > { %v1116_v62 = vpop.f32.mrf.mxu2 }
 0x1fd   : > { %v1130_v63 = vpop.f32.mrf.mxu3 }
 0x1fe   : > { %v1131_v52 = vadd.f32 %v1130_v63, %v1116_v62 }
 0x204   : > { %v1180_v0 = vpop.f32.mrf.mxu2 }
 0x205   : > { %v1194_v53 = vpop.f32.mrf.mxu3 }
 0x20c   : > { %v1182_v1 = vpop.f32.mrf.mxu2 }
 0x20d   : > { %v1199_v2 = vpack.c.bf16 %v1182_v1, %v1180_v0  ;;  %v1196_v3 = vpop.f32.mrf.mxu3 }
 0x20e   : > { %v1200_v56 = vpack.c.bf16 %v1196_v3, %v1194_v53 }
 0x20f   : > { %1401 = vmatmul.bf16.vlgmr.msra.gmra.mxu0 %v1199_v2  ;;  %1429 = vmatmul.bf16.vlgmr.msra.gmra.mxu2 %v1199_v2 }
 0x210   : > { %1415 = vmatmul.bf16.vlgmr.msra.gmra.mxu1 %v1200_v56  ;;  %1443 = vmatmul.bf16.vlgmr.msra.gmra.mxu3 %v1200_v56 }
 0x28c   : > { %v1402_v8 = vpop.f32.mrf.mxu0 }
 0x28d   : > { %v1416_v9 = vpop.f32.mrf.mxu1 }
 0x28e   : > { %v1417_v10 = vadd.f32 %v1416_v9, %v1402_v8 }
 0x290   : > { %v1449_v11 = vsub.f32 %v1129_v61, %v1417_v10 }
 0x292   : > { %v1453_v13 = vsub.f32 %v1449_v11, %v2597_v32  ;;  %v1430_v14 = vpop.f32.mrf.mxu2 }
 0x293   : > { %v1444_v16 = vpop.f32.mrf.mxu3 }
 0x294   : > { %v1457_v36 = vmul.f32 %v1453_v13, %v863_v12  ;;  %v1445_v17 = vadd.f32 %v1444_v16, %v1430_v14  ;;  %v1404_v18 = vpop.f32.mrf.mxu0 }
 0x295   : > { %v1418_v22 = vpop.f32.mrf.mxu1 }
 0x296   : > { %v1461_v25 = vadd.f32 %v1457_v36, %v2597_v32  ;;  %v1450_v23 = vsub.f32 %v1157_v45, %v1445_v17  ;;  %v1419_v24 = vadd.f32 %v1418_v22, %v1404_v18 }
 0x298   : > { %1465 = vst [vmem:[%s2540_s23] sm:$0xff] %v1461_v25  ;;  %v1454_v26 = vsub.f32 %v1450_v23, %v2603_v34  ;;  %v1451_v27 = vsub.f32 %v1131_v52, %v1419_v24 }
 0x29a   : > { %v1458_v41 = vmul.f32 %v1454_v26, %v863_v12  ;;  %v1455_v28 = vsub.f32 %v1451_v27, %v2600_v44  ;;  %v1432_v29 = vpop.f32.mrf.mxu2 }
 0x29b   : > { %v1446_v31 = vpop.f32.mrf.mxu3 }
 0x29c   : > { %v1462_v35 = vadd.f32 %v1458_v41, %v2603_v34  ;;  %v1459_v19 = vmul.f32 %v1455_v28, %v863_v12  ;;  %v1447_v33 = vadd.f32 %v1446_v31, %v1432_v29 }
 0x29e   : > { %1466 = vst [vmem:[%s2540_s23 + $0x8] sm:$0xff] %v1462_v35  ;;  %v1463_v32 = vadd.f32 %v1459_v19, %v2600_v44  ;;  %v1452_v20 = vsub.f32 %v1159_v30, %v1447_v33 }
 0x2a0   : > { %1467 = vst [vmem:[%s2540_s23 + $0x10] sm:$0xff] %v1463_v32  ;;  %v1456_v48 = vsub.f32 %v1452_v20, %v2610_v15 }
 0x2a2   : > { %v1460_v37 = vmul.f32 %v1456_v48, %v863_v12 }
 0x2a4   : > { %v1464_v38 = vadd.f32 %v1460_v37, %v2610_v15 }
 0x2a6   : > { %1468 = vst [vmem:[%s2540_s23 + $0x18] sm:$0xff] %v1464_v38 }
 0x2a7 PF: > { %p2004_p8 = scmp.le.s32.totalorder %s2550_s20, 0 }
 0x2a8   : > { %s1479_s25 = scvt.s32.f32 (!%p2004_p8), %s2550_s20 }
 0x2a9   : > { %1472 = sbr.rel (%p2004_p8) target bundleno = 887 (0x377), region = 76 }
 0x2ae   : > { %v2645_v34 = vld [vmem:[%s2540_s23] sm:$0xff]  ;;  %v2648_v21 = vld [vmem:[%s2540_s23 + $0x8] sm:$0xff]  ;;  %v2655_v15 = vld [vmem:[%s2540_s23 + $0x10] sm:$0xff] }
 0x2af   : > { %v1500_v44 = vmax.f32 %v2645_v34, %v2648_v21  ;;  %v1487_v39 = vmin.f32 %v2645_v34, %v2648_v21  ;;  %v2658_v40 = vld [vmem:[%s2540_s23 + $0x18] sm:$0xff] }
 0x2b0   : > { %v1503_v42 = vmax.f32 %v2655_v15, %v2658_v40  ;;  %v1490_v43 = vmin.f32 %v2655_v15, %v2658_v40 }
 0x2b1   : > { %1501 = vmax.xlane.f32.xlu1 %v1500_v44  ;;  %1488 = vmin.xlane.f32.xlu0 %v1487_v39 }
 0x2b9   : > { %1504 = vmax.xlane.f32.xlu1 %v1503_v42  ;;  %1491 = vmin.xlane.f32.xlu0 %v1490_v43 }
 0x324   : > { %v1502_v46 = vpop.xlane.xlu1 %1501  ;;  %v1489_v47 = vpop.xlane.xlu0 %1488 }
 0x32c   : > { %v1505_v50 = vpop.xlane.xlu1 %1504  ;;  %v1492_v51 = vpop.xlane.xlu0 %1491 }
 0x32d   : > { %v1506_v54 = vmax.f32 %v1502_v46, %v1505_v50  ;;  %v1493_v55 = vmin.f32 %v1489_v47, %v1492_v51 }
 0x32f   : > { %v1507_v57 = vrot.slane %v1506_v54, 4  ;;  %v1494_v58 = vrot.slane %v1493_v55, 4 }
 0x331   : > { %v1508_v59 = vmax.f32 %v1506_v54, %v1507_v57  ;;  %v1495_v60 = vmin.f32 %v1493_v55, %v1494_v58 }
 0x333   : > { %v1509_v49 = vrot.slane %v1508_v59, 2  ;;  %v1496_v61 = vrot.slane %v1495_v60, 2 }
 0x335   : > { %v1510_v62 = vmax.f32 %v1508_v59, %v1509_v49  ;;  %v1497_v63 = vmin.f32 %v1495_v60, %v1496_v61  ;;  %v1480_v49 = vstv %s1479_s25 }
 0x337   : > { %v1511_v52 = vrot.slane %v1510_v62, 1  ;;  %v1498_v0 = vrot.slane %v1497_v63, 1 }
 0x339   : > { %v1512_v53 = vmax.f32 %v1510_v62, %v1511_v52  ;;  %v2664_v1 = vmin.f32 %v1497_v63, %v1498_v0 }
 0x33b   : > { %v2667_v2 = vsub.f32 %v1512_v53, %v2664_v1  ;;  %v1530_v11 = vsub.f32 %v2645_v34, %v2664_v1  ;;  %v1531_v12 = vsub.f32 %v2648_v21, %v2664_v1  ;;  %v1532_v14 = vsub.f32 %v2655_v15, %v2664_v1 }
 0x33c   : > { %v1533_v16 = vsub.f32 %v2658_v40, %v2664_v1 }
 0x33d   : > { %v1514_v3 = vadd.f32 1e-07, %v2667_v2 }
 0x33f   : > { %2161 = vrcp.f32 %v1514_v3  ;;  %v1526_v6 = vand.u32 2147483648, %v1514_v3  ;;  %v1524_v8 = vand.u32 2147483647, %v1514_v3  ;;  %vm1520_vm2 = vweird.f32 %v1514_v3 }
 0x341   : > { %v1527_v10 = vor.u32 1.1754944e-38, %v1526_v6  ;;  %vm1525_vm4 = vcmp.eq.f32.partialorder %v1524_v8, 8.507059e+37 }
 0x345   : > { %v2162_v56 = vpop.eup %2161 }
 0x346   : > { %v1516_v4 = vmul.f32 %v2162_v56, %v1514_v3  ;;  %vm1521_vm1 = vweird.f32 %v2162_v56 }
 0x347   : > { %vm1522_vm3 = vmor %vm1520_vm2, %vm1521_vm1 }
 0x348   : > { %v1517_v5 = vsub.f32 1.0, %v1516_v4 }
 0x34a   : > { %v1518_v7 = vmul.f32 %v2162_v56, %v1517_v5 }
 0x34c   : > { %v1519_v9 = vadd.f32 %v2162_v56, %v1518_v7 }
 0x34e   : > { %v1523_v13 = vsel %vm1522_vm3, %v2162_v56, %v1519_v9 }
 0x34f   : > { %v1528_v45 = vsel %vm1525_vm4, %v1527_v10, %v1523_v13 }
 0x350   : > { %v1534_v36 = vmul.f32 %v1530_v11, %v1528_v45  ;;  %v1535_v17 = vmul.f32 %v1531_v12, %v1528_v45  ;;  %v1536_v18 = vmul.f32 %v1532_v14, %v1528_v45  ;;  %v1537_v22 = vmul.f32 %v1533_v16, %v1528_v45 }
 0x352   : > { %v1542_v25 = vmax.f32 %v1534_v36, 1e-30  ;;  %v1543_v23 = vmax.f32 %v1535_v17, 1e-30  ;;  %v1544_v24 = vmax.f32 %v1536_v18, 1e-30 }
 0x353   : > { %v1545_v26 = vmax.f32 %v1537_v22, 1e-30  ;;  %vm1538_vm5 = vcmp.gt.f32.partialorder %v1534_v36, 0.0  ;;  %vm1539_vm6 = vcmp.gt.f32.partialorder %v1535_v17, 0.0  ;;  %vm1540_vm7 = vcmp.gt.f32.partialorder %v1536_v18, 0.0 }
 0x354   : > { %2163 = vlog2.f32 %v1542_v25  ;;  %vm1541_vm8 = vcmp.gt.f32.partialorder %v1537_v22, 0.0 }
 0x355   : > { %2165 = vlog2.f32 %v1543_v23 }
 0x356   : > { %2167 = vlog2.f32 %v1544_v24 }
 0x357   : > { %2169 = vlog2.f32 %v1545_v26 }
 0x35a   : > { %v2164_v27 = vpop.eup %2163 }
 0x35b   : > { %v2166_v41 = vpop.eup %2165  ;;  %v1547_v28 = vmul.f32 0.6931472, %v2164_v27 }
 0x35c   : > { %v2168_v29 = vpop.eup %2167  ;;  %v1549_v31 = vmul.f32 0.6931472, %v2166_v41 }
 0x35d   : > { %v2170_v30 = vpop.eup %2169  ;;  %v1551_v35 = vmul.f32 0.6931472, %v2168_v29  ;;  %v1554_v19 = vmul.f32 1.1, %v1547_v28 }
 0x35e   : > { %v1553_v33 = vmul.f32 0.6931472, %v2170_v30  ;;  %v1555_v32 = vmul.f32 1.1, %v1549_v31 }
 0x35f   : > { %v1556_v20 = vmul.f32 1.1, %v1551_v35  ;;  %v1558_v48 = vmul.f32 1.442695, %v1554_v19 }
 0x360   : > { %v1557_v37 = vmul.f32 1.1, %v1553_v33  ;;  %v1560_v38 = vmul.f32 1.442695, %v1555_v32 }
 0x361   : > { %2171 = vpow2.f32 %v1558_v48  ;;  %v1562_v44 = vmul.f32 1.442695, %v1556_v20 }
 0x362   : > { %2173 = vpow2.f32 %v1560_v38  ;;  %v1564_v39 = vmul.f32 1.442695, %v1557_v37 }
 0x363   : > { %2175 = vpow2.f32 %v1562_v44 }
 0x364   : > { %2177 = vpow2.f32 %v1564_v39 }
 0x367   : > { %v2172_v42 = vpop.eup %2171 }
 0x368   : > { %v2174_v43 = vpop.eup %2173  ;;  %v1566_v46 = vsel %vm1538_vm5, %v2172_v42, 0.0 }
 0x369   : > { %v2176_v47 = vpop.eup %2175  ;;  %v1567_v50 = vsel %vm1539_vm6, %v2174_v43, 0.0  ;;  %v1570_v51 = vmul.f32 %v1566_v46, %v2667_v2 }
 0x36a   : > { %v2178_v54 = vpop.eup %2177  ;;  %v1568_v55 = vsel %vm1540_vm7, %v2176_v47, 0.0  ;;  %v1571_v57 = vmul.f32 %v1567_v50, %v2667_v2 }
 0x36b   : > { %v1569_v58 = vsel %vm1541_vm8, %v2178_v54, 0.0  ;;  %v1572_v59 = vmul.f32 %v1568_v55, %v2667_v2  ;;  %v1574_v60 = vadd.f32 %v1570_v51, %v2664_v1 }
 0x36c   : > { %v1573_v61 = vmul.f32 %v1569_v58, %v2667_v2  ;;  %v1575_v62 = vadd.f32 %v1571_v57, %v2664_v1 }
 0x36d   : > { %v1576_v63 = vadd.f32 %v1572_v59, %v2664_v1  ;;  %v1578_v52 = vsub.f32 %v1574_v60, %v2645_v34 }
 0x36e   : > { %v1577_v0 = vadd.f32 %v1573_v61, %v2664_v1  ;;  %v1579_v53 = vsub.f32 %v1575_v62, %v2648_v21 }
 0x36f   : > { %v1580_v3 = vsub.f32 %v1576_v63, %v2655_v15  ;;  %v1582_v56 = vmul.f32 %v1578_v52, %v1480_v49 }
 0x370   : > { %v1581_v4 = vsub.f32 %v1577_v0, %v2658_v40  ;;  %v1583_v5 = vmul.f32 %v1579_v53, %v1480_v49 }
 0x371   : > { %v1584_v2 = vmul.f32 %v1580_v3, %v1480_v49  ;;  %v1586_v6 = vadd.f32 %v1582_v56, %v2645_v34 }
 0x372   : > { %v1585_v7 = vmul.f32 %v1581_v4, %v1480_v49  ;;  %v1587_v8 = vadd.f32 %v1583_v5, %v2648_v21 }
 0x373   : > { %v1588_v9 = vadd.f32 %v1584_v2, %v2655_v15  ;;  %1590 = vst [vmem:[%s2540_s23] sm:$0xff] %v1586_v6 }
 0x374   : > { %v1589_v10 = vadd.f32 %v1585_v7, %v2658_v40  ;;  %1591 = vst [vmem:[%s2540_s23 + $0x8] sm:$0xff] %v1587_v8 }
 0x375   : > { %1592 = vst [vmem:[%s2540_s23 + $0x10] sm:$0xff] %v1588_v9 }
 0x376   : > { %1593 = vst [vmem:[%s2540_s23 + $0x18] sm:$0xff] %v1589_v10 }
 0x377 PF: > { %s2077_s30 = sshll.u32 %s2433_s1, 5  ;;  %s1607_s22 = sshll.u32 %s2540_s23, 4  ;;  %s1608_s22 = int_to_ptr.vmem [resolvable:$true] %s1607_s22 }
 0x378   : > { %s1606_s21 = scalar_lea.hbm %s2740_s7, %s2077_s30  ;;  %s1595_s24 = scalar_lea.sflag [#allocation5], %s2527_s12 }
 0x379   : > { %s1609_s16 = sshll.u32 %s1606_s21, 4  ;;  %s2304_s1 = scalar_lea.hbm %s2740_s7, 64  ;;  %s1610_s16 = int_to_ptr.hbm [resolvable:$true] %s1609_s16 }
 0x37a   : > { %s2298_s14 = sshra.s32 %s1610_s16, 4  ;;  %s2299_s14 = int_to_ptr.hbm [resolvable:$true] %s2298_s14 }
 0x37b   : > { %s2300_s18 = scalar_lea.hbm %s2299_s14, 32  ;;  %p2305_p10 = scmp.lt.s32.totalorder %s2299_s14, %s2740_s7 }
 0x37c   : > { %p2301_p11 = scmp.ne.s32.totalorder %s2299_s14, %s2300_s18  ;;  %p2306_p12 = scmp.lt.s32.totalorder %s2304_s1, %s2300_s18 }
 0x37e   : > { %p2302_p9 = pnand %p2301_p11, %p2495_p7  ;;  %p2307_p13 = por %p2306_p12, %p2305_p10 }
 0x380   : > { %p2303_p2 = pneg %p2302_p9 }
 0x382   : > { %p2308_p0 = pnand %p2307_p13, %p2303_p2 }
 0x384   : > { %2311 = shalt.err (!%p2308_p0)
}
 0x385   : > { %s2367_s12 = smov 256   ;;  %s2368_s23 = smov 16  }
 0x386   : > { %2092 = dma.vmem_to_hbm [thread:$0]  (%p2495_p7), %s1608_s22, 512, %s1610_s16, %s1595_s24, %s2367_s12, %s2367_s12, %s2368_s23  }
 0x387 PF: > { %s1624_s30 = sand.u32 1, %s2346_s26   ;;  %p2747_p3 = scmp.ge.s32.totalorder %s2358_s29, 2 }
 0x388   : > { %s1625_s10 = scalar_lea.sflag [#allocation5], %s1624_s30 }
 0x389   : > { %p2109_p5 = pnand %p2747_p3, %p2447_p6 }
 0x38b   : > { %p2110_p1 = pneg %p2109_p5 }
 0x38d   : > { %2341 = dma.done.wait (%p2110_p1), %s1625_s10, 512  }
 0x38e   : > { %2343 = vsyncadd (%p2110_p1), %s1625_s10, 4294966784  ;;  %p23_p4 = scmp.ge.s32.totalorder %s2481_s11, 4   ;;  %s2748_s26 = smov %s2350_s27 }
 0x38f   : > { %s2749_s27 = smov %s2354_s28  ;;  %s2750_s28 = smov %s2491_s15 }
 0x390   : > { %s2751_s29 = smov %s2481_s11  ;;  %25 = sbr.rel (!%p23_p4) target bundleno = 9 (0x9), region = 118 }
 0x395   :  { %1631 = vsyncpa [#allocation4], 1 }
 0x396   :  { %1633 = vsyncpa [#allocation4 + $0x1], 1 }
 0x397   :  { %1634 = vsyncpa [#allocation9], 1 }
 0x398   :  { %1635 = vsyncpa [#allocation5], 1 }
 0x399   :  { %1637 = vsyncpa [#allocation5 + $0x1], 1 }
 0x39a   :  { %1638 = vsyncpa [#allocation6], 1 }
 0x39b   :  { %1640 = vsyncpa [#allocation6 + $0x1], 1 }

</bundles_post_ra>
